<compile_context>
chip_gen: v6e
topology: v6e:2x2x1
jax: 0.10.0
libtpu: 0.0.40
codegen_flags: <defaults>
</compile_context>

<pallas_src>
import functools

import jax
import jax.numpy as jnp
from jax.experimental import pallas as pl
from jax.experimental.pallas import tpu as pltpu


LANE = 128  # lane width; latent_dim (64) is padded up to this


def _round_up(n, m):
    return (n + m - 1) // m * m


# ---------------------------------------------------------------------------
# Kernel
# ---------------------------------------------------------------------------
def latent_unet_kernel(x_ref, cond_ref,
                       wc_ref, bc_ref,
                       w1_ref, b1_ref,
                       w2_ref, b2_ref,
                       w3_ref, b3_ref,
                       o_ref):
    f32 = jnp.float32
    bf16 = jnp.bfloat16
    # cond_emb = cond @ Wc + bc     (native bf16 x bf16 -> f32 MXU accumulate)
    cond_emb = jnp.dot(cond_ref[...], wc_ref[...],
                       preferred_element_type=f32) + bc_ref[...]
    # x = x + cond_emb              (f32 add; x upcast from bf16)
    h = x_ref[...].astype(f32) + cond_emb
    # net: Linear(latent,512) -> ReLU -> Linear(512,512) -> ReLU -> Linear(512,latent)
    h = jnp.dot(h.astype(bf16), w1_ref[...], preferred_element_type=f32) + b1_ref[...]
    h = jnp.maximum(h, 0.0)
    h = jnp.dot(h.astype(bf16), w2_ref[...], preferred_element_type=f32) + b2_ref[...]
    h = jnp.maximum(h, 0.0)
    out = jnp.dot(h.astype(bf16), w3_ref[...], preferred_element_type=f32) + b3_ref[...]
    o_ref[...] = out.astype(o_ref.dtype)


# ---------------------------------------------------------------------------
# Parameter prep (done once, outside the per-step call):
#   * lane-pad latent_dim -> 128 (and cond_dim -> multiple of 128 if needed)
#   * cast weight matrices to bf16 (biases stay f32)
# ---------------------------------------------------------------------------
def prepare_params(params, latent_dim=64):
    wc, bc, w1, b1, w2, b2, w3, b3 = params
    cond_dim = wc.shape[0]
    pad = _round_up(latent_dim, LANE) - latent_dim
    cpad = _round_up(cond_dim, LANE) - cond_dim
    bf16 = jnp.bfloat16

    wc_p = jnp.pad(wc, ((0, cpad), (0, pad))).astype(bf16)   # (cond_dim_p, LANE)
    bc_p = jnp.pad(bc, ((0, 0), (0, pad)))                   # (1, LANE)  f32
    w1_p = jnp.pad(w1, ((0, pad), (0, 0))).astype(bf16)      # (LANE, hidden)
    w3_p = jnp.pad(w3, ((0, 0), (0, pad))).astype(bf16)      # (hidden, LANE)
    b3_p = jnp.pad(b3, ((0, 0), (0, pad)))                   # (1, LANE)  f32
    return (wc_p, bc_p, w1_p, b1, w2.astype(bf16), b2, w3_p, b3_p)


def _vmem_limit_bytes(tb, cond_dim, lane_pad, hidden):
    # single-resident bf16 weights + f32 biases (constant blocks)
    weight_b = (cond_dim * lane_pad + lane_pad * hidden
                + hidden * hidden + hidden * lane_pad) * 2
    bias_b = (2 * lane_pad + 2 * hidden) * 4
    # double-buffered streamed tiles: x bf16, cond bf16, out f32
    tile_b = 2 * (tb * lane_pad * 2 + tb * cond_dim * 2 + tb * lane_pad * 4)
    # in-kernel intermediates (f32 hidden slab + bf16 MXU operand copies)
    act_b = 3 * tb * hidden * 4
    need = weight_b + bias_b + tile_b + act_b
    return int(min(max(2 * need, 16 << 20), 32 << 20))


# ---------------------------------------------------------------------------
# Forward wrapper
# ---------------------------------------------------------------------------
@functools.partial(jax.jit,
                   static_argnames=("latent_dim", "max_tb", "single_buffer_weights"))
def latent_unet_forward(x, cond, prepared, *, latent_dim=64, max_tb=512,
                        single_buffer_weights=True):
    wc, bc, w1, b1, w2, b2, w3, b3 = prepared
    out_dtype = x.dtype
    B = x.shape[0]
    lane_pad = wc.shape[1]
    cond_dim_p = wc.shape[0]
    hidden = w1.shape[1]

    # Batch tile: multiple of 8 (sublane).  No batch padding: grid = cdiv(B, tb),
    # Pallas masks the ragged last block (computation is row-independent).
    b8 = _round_up(B, 8)
    tb = min(max_tb, b8)
    if b8 >= 16 and pl.cdiv(b8, tb) < 2:
        tb = _round_up(b8 // 2, 8)   # give v7x megacore >= 2 parallel grid steps
    grid = (pl.cdiv(B, tb),)

    # Stream activations in bf16.  x gets a tiny lane pad (latent_dim -> 128);
    # cond (768) is already a multiple of 128, so no full-array pad copy.
    x_p = jnp.pad(x, ((0, 0), (0, lane_pad - latent_dim))).astype(jnp.bfloat16)
    cond_p = cond.astype(jnp.bfloat16)
    if cond_dim_p != cond.shape[1]:
        cond_p = jnp.pad(cond_p, ((0, 0), (0, cond_dim_p - cond.shape[1])))

    batch_map = lambda i: (i, 0)   # tiled over batch
    const_map = lambda i: (0, 0)   # weights/biases resident across grid steps

    if single_buffer_weights and hasattr(pl, "Buffered"):
        def wspec(arr):   # constant block -> no need for double buffering
            return pl.BlockSpec(arr.shape, const_map, pipeline_mode=pl.Buffered(1))
    else:
        def wspec(arr):
            return pl.BlockSpec(arr.shape, const_map)

    in_specs = [
        pl.BlockSpec((tb, lane_pad), batch_map),      # x   (bf16)
        pl.BlockSpec((tb, cond_dim_p), batch_map),    # cond (bf16)
        wspec(wc), wspec(bc),
        wspec(w1), wspec(b1),
        wspec(w2), wspec(b2),
        wspec(w3), wspec(b3),
    ]
    out_spec = pl.BlockSpec((tb, lane_pad), batch_map)

    out_pad = pl.pallas_call(
        latent_unet_kernel,
        out_shape=jax.ShapeDtypeStruct((B, lane_pad), out_dtype),
        grid=grid,
        in_specs=in_specs,
        out_specs=out_spec,
        compiler_params=pltpu.CompilerParams(
            dimension_semantics=("parallel",),
            vmem_limit_bytes=_vmem_limit_bytes(tb, cond_dim_p, lane_pad, hidden),
        ),
    )(x_p, cond_p, wc, bc, w1, b1, w2, b2, w3, b3)

    return out_pad[:, :latent_dim]


# ---------------------------------------------------------------------------
# Init + references
# ---------------------------------------------------------------------------
def init_params(key, latent_dim=64, cond_dim=768, hidden=512):
    """Deterministic init mimicking PyTorch nn.Linear default U(-1/sqrt(fan_in), +)."""
    def linear(key, fan_in, fan_out):
        kw, kb = jax.random.split(key)
        bound = 1.0 / jnp.sqrt(fan_in)
        w = jax.random.uniform(kw, (fan_in, fan_out), jnp.float32, -bound, bound)
        b = jax.random.uniform(kb, (1, fan_out), jnp.float32, -bound, bound)
        return w, b

    k = jax.random.split(key, 4)
    wc, bc = linear(k[0], cond_dim, latent_dim)
    w1, b1 = linear(k[1], latent_dim, hidden)
    w2, b2 = linear(k[2], hidden, hidden)
    w3, b3 = linear(k[3], hidden, latent_dim)
    return (wc, bc, w1, b1, w2, b2, w3, b3)


def reference_forward_bf16(x, cond, prepared, latent_dim):
    """Reference matching the kernel's mixed precision: bf16 operands, f32 accumulate."""
    wc, bc, w1, b1, w2, b2, w3, b3 = prepared
    bf16, f32 = jnp.bfloat16, jnp.float32
    lane_pad = wc.shape[1]
    xp = jnp.pad(x, ((0, 0), (0, lane_pad - latent_dim))).astype(bf16)
    cp = jnp.pad(cond, ((0, 0), (0, wc.shape[0] - cond.shape[1]))).astype(bf16)
    h = xp.astype(f32) + (jnp.dot(cp, wc, preferred_element_type=f32) + bc)
    h = jnp.maximum(jnp.dot(h.astype(bf16), w1, preferred_element_type=f32) + b1, 0.0)
    h = jnp.maximum(jnp.dot(h.astype(bf16), w2, preferred_element_type=f32) + b2, 0.0)
    out = jnp.dot(h.astype(bf16), w3, preferred_element_type=f32) + b3
    return out[:, :latent_dim]


def reference_forward_full(x, cond, params):
    """Full-precision module semantics (f32 weights/activations)."""
    wc, bc, w1, b1, w2, b2, w3, b3 = params
    h = x + (cond @ wc + bc)
    h = jnp.maximum(h @ w1 + b1, 0.0)
    h = jnp.maximum(h @ w2 + b2, 0.0)
    return h @ w3 + b3


if __name__ == "__main__":
    B, latent_dim, cond_dim, hidden = 8, 64, 768, 512
    key = jax.random.PRNGKey(0)
    kx, kc, kp = jax.random.split(key, 3)

    x = jax.random.normal(kx, (B, latent_dim), jnp.float32)
    cond = jax.random.normal(kc, (B, cond_dim), jnp.float32)
    params = init_params(kp, latent_dim=latent_dim, cond_dim=cond_dim, hidden=hidden)
    prepared = prepare_params(params, latent_dim=latent_dim)

    try:
        out = jax.block_until_ready(
            latent_unet_forward(x, cond, prepared, latent_dim=latent_dim))
    except Exception:
        # Fallback if this JAX build rejects Buffered(1) single-buffering.
        out = jax.block_until_ready(
            latent_unet_forward(x, cond, prepared, latent_dim=latent_dim,
                                single_buffer_weights=False))

    ref_bf16 = reference_forward_bf16(x, cond, prepared, latent_dim)
    ref_full = reference_forward_full(x, cond, params)

    assert out.shape == (B, latent_dim)
    assert out.dtype == jnp.float32
    # Matches the bf16-operand / f32-accumulate computation the kernel performs.
    assert jnp.allclose(out, ref_bf16, atol=5e-3, rtol=5e-3)
    # Close to the original f32 module (difference is bf16 weight/activation rounding).
    assert jnp.allclose(out, ref_full, atol=1e-1, rtol=1e-1)

    print("KERNEL_OK")
</pallas_src>

<mosaic_0001>
module attributes {stable_mosaic.version = 11 : i64} {
  func.func @latent_unet_kernel(%arg0: i32, %arg1: memref<8x128xbf16, #tpu.memory_space<vmem>>, %arg2: memref<8x768xbf16, #tpu.memory_space<vmem>>, %arg3: memref<768x128xbf16, #tpu.memory_space<vmem>>, %arg4: memref<1x128xf32, #tpu.memory_space<vmem>>, %arg5: memref<128x512xbf16, #tpu.memory_space<vmem>>, %arg6: memref<1x512xf32, #tpu.memory_space<vmem>>, %arg7: memref<512x512xbf16, #tpu.memory_space<vmem>>, %arg8: memref<1x512xf32, #tpu.memory_space<vmem>>, %arg9: memref<512x128xbf16, #tpu.memory_space<vmem>>, %arg10: memref<1x128xf32, #tpu.memory_space<vmem>>, %arg11: memref<8x128xf32, #tpu.memory_space<vmem>>) attributes {dimension_semantics = [#tpu.dimension_semantics<parallel>], iteration_bounds = array<i64: 1>, scalar_prefetch = 0 : i64, scratch_operands = 0 : i64, tpu.core_type = #tpu.core_type<tc>, window_params = [{transform_indices = @transform_0, window_bounds = array<i64: 8, 128>}, {transform_indices = @transform_1, window_bounds = array<i64: 8, 768>}, {pipeline_mode = #tpu.pipeline_mode<synchronous>, transform_indices = @transform_2, window_bounds = array<i64: 768, 128>}, {pipeline_mode = #tpu.pipeline_mode<synchronous>, transform_indices = @transform_3, window_bounds = array<i64: 1, 128>}, {pipeline_mode = #tpu.pipeline_mode<synchronous>, transform_indices = @transform_4, window_bounds = array<i64: 128, 512>}, {pipeline_mode = #tpu.pipeline_mode<synchronous>, transform_indices = @transform_5, window_bounds = array<i64: 1, 512>}, {pipeline_mode = #tpu.pipeline_mode<synchronous>, transform_indices = @transform_6, window_bounds = array<i64: 512, 512>}, {pipeline_mode = #tpu.pipeline_mode<synchronous>, transform_indices = @transform_7, window_bounds = array<i64: 1, 512>}, {pipeline_mode = #tpu.pipeline_mode<synchronous>, transform_indices = @transform_8, window_bounds = array<i64: 512, 128>}, {pipeline_mode = #tpu.pipeline_mode<synchronous>, transform_indices = @transform_9, window_bounds = array<i64: 1, 128>}, {transform_indices = @transform_10, window_bounds = array<i64: 8, 128>}]} {
    %c0 = arith.constant 0 : index
    %c0_0 = arith.constant 0 : index
    %0 = vector.load %arg2[%c0, %c0_0] : memref<8x768xbf16, #tpu.memory_space<vmem>>, vector<8x768xbf16>
    %c0_1 = arith.constant 0 : index
    %c0_2 = arith.constant 0 : index
    %1 = vector.load %arg3[%c0_1, %c0_2] : memref<768x128xbf16, #tpu.memory_space<vmem>>, vector<768x128xbf16>
    %cst = arith.constant dense<0.000000e+00> : vector<8x128xf32>
    %2 = tpu.matmul %0, %1, %cst {dimension_numbers = #tpu.dot_dimension_numbers<[1], [0], [0], [1], [0, 0, 1, 1], [], []>} : vector<8x768xbf16>, vector<768x128xbf16>, vector<8x128xf32> -> vector<8x128xf32>
    %c0_3 = arith.constant 0 : index
    %c0_4 = arith.constant 0 : index
    %3 = vector.load %arg4[%c0_3, %c0_4] : memref<1x128xf32, #tpu.memory_space<vmem>>, vector<1x128xf32>
    %4 = vector.broadcast %3 : vector<1x128xf32> to vector<8x128xf32>
    %5 = arith.addf %2, %4 : vector<8x128xf32>
    %c0_5 = arith.constant 0 : index
    %c0_6 = arith.constant 0 : index
    %6 = vector.load %arg1[%c0_5, %c0_6] : memref<8x128xbf16, #tpu.memory_space<vmem>>, vector<8x128xbf16>
    %7 = arith.extf %6 : vector<8x128xbf16> to vector<8x128xf32>
    %8 = arith.addf %7, %5 : vector<8x128xf32>
    %9 = arith.truncf %8 : vector<8x128xf32> to vector<8x128xbf16>
    %c0_7 = arith.constant 0 : index
    %c0_8 = arith.constant 0 : index
    %10 = vector.load %arg5[%c0_7, %c0_8] : memref<128x512xbf16, #tpu.memory_space<vmem>>, vector<128x512xbf16>
    %cst_9 = arith.constant dense<0.000000e+00> : vector<8x512xf32>
    %11 = tpu.matmul %9, %10, %cst_9 {dimension_numbers = #tpu.dot_dimension_numbers<[1], [0], [0], [1], [0, 0, 1, 1], [], []>} : vector<8x128xbf16>, vector<128x512xbf16>, vector<8x512xf32> -> vector<8x512xf32>
    %c0_10 = arith.constant 0 : index
    %c0_11 = arith.constant 0 : index
    %12 = vector.load %arg6[%c0_10, %c0_11] : memref<1x512xf32, #tpu.memory_space<vmem>>, vector<1x512xf32>
    %13 = vector.broadcast %12 : vector<1x512xf32> to vector<8x512xf32>
    %14 = arith.addf %11, %13 : vector<8x512xf32>
    %cst_12 = arith.constant 0.000000e+00 : f32
    %15 = vector.broadcast %cst_12 : f32 to vector<8x512xf32>
    %16 = arith.maximumf %14, %15 : vector<8x512xf32>
    %17 = arith.truncf %16 : vector<8x512xf32> to vector<8x512xbf16>
    %c0_13 = arith.constant 0 : index
    %c0_14 = arith.constant 0 : index
    %18 = vector.load %arg7[%c0_13, %c0_14] : memref<512x512xbf16, #tpu.memory_space<vmem>>, vector<512x512xbf16>
    %cst_15 = arith.constant dense<0.000000e+00> : vector<8x512xf32>
    %19 = tpu.matmul %17, %18, %cst_15 {dimension_numbers = #tpu.dot_dimension_numbers<[1], [0], [0], [1], [0, 0, 1, 1], [], []>} : vector<8x512xbf16>, vector<512x512xbf16>, vector<8x512xf32> -> vector<8x512xf32>
    %c0_16 = arith.constant 0 : index
    %c0_17 = arith.constant 0 : index
    %20 = vector.load %arg8[%c0_16, %c0_17] : memref<1x512xf32, #tpu.memory_space<vmem>>, vector<1x512xf32>
    %21 = vector.broadcast %20 : vector<1x512xf32> to vector<8x512xf32>
    %22 = arith.addf %19, %21 : vector<8x512xf32>
    %cst_18 = arith.constant 0.000000e+00 : f32
    %23 = vector.broadcast %cst_18 : f32 to vector<8x512xf32>
    %24 = arith.maximumf %22, %23 : vector<8x512xf32>
    %25 = arith.truncf %24 : vector<8x512xf32> to vector<8x512xbf16>
    %c0_19 = arith.constant 0 : index
    %c0_20 = arith.constant 0 : index
    %26 = vector.load %arg9[%c0_19, %c0_20] : memref<512x128xbf16, #tpu.memory_space<vmem>>, vector<512x128xbf16>
    %cst_21 = arith.constant dense<0.000000e+00> : vector<8x128xf32>
    %27 = tpu.matmul %25, %26, %cst_21 {dimension_numbers = #tpu.dot_dimension_numbers<[1], [0], [0], [1], [0, 0, 1, 1], [], []>} : vector<8x512xbf16>, vector<512x128xbf16>, vector<8x128xf32> -> vector<8x128xf32>
    %c0_22 = arith.constant 0 : index
    %c0_23 = arith.constant 0 : index
    %28 = vector.load %arg10[%c0_22, %c0_23] : memref<1x128xf32, #tpu.memory_space<vmem>>, vector<1x128xf32>
    %29 = vector.broadcast %28 : vector<1x128xf32> to vector<8x128xf32>
    %30 = arith.addf %27, %29 : vector<8x128xf32>
    %c0_24 = arith.constant 0 : index
    %c0_25 = arith.constant 0 : index
    %31 = vector.load %arg11[%c0_24, %c0_25] : memref<8x128xf32, #tpu.memory_space<vmem>>, vector<8x128xf32>
    tpu.vector_store %arg11[%c0_24, %c0_25], %30 {strides = array<i32>} : memref<8x128xf32, #tpu.memory_space<vmem>>, vector<8x128xf32>,
    return
  }
  func.func @transform_0(%arg0: i32) -> (i32, i32) {
    %c0_i32 = arith.constant 0 : i32
    %c0_i32_0 = arith.constant 0 : i32
    return %arg0, %c0_i32 : i32, i32
  }
  func.func @transform_1(%arg0: i32) -> (i32, i32) {
    %c0_i32 = arith.constant 0 : i32
    %c0_i32_0 = arith.constant 0 : i32
    return %arg0, %c0_i32 : i32, i32
  }
  func.func @transform_2(%arg0: i32) -> (i32, i32) {
    %c0_i32 = arith.constant 0 : i32
    %c0_i32_0 = arith.constant 0 : i32
    %c0_i32_1 = arith.constant 0 : i32
    return %c0_i32, %c0_i32_0 : i32, i32
  }
  func.func @transform_3(%arg0: i32) -> (i32, i32) {
    %c0_i32 = arith.constant 0 : i32
    %c0_i32_0 = arith.constant 0 : i32
    %c0_i32_1 = arith.constant 0 : i32
    return %c0_i32, %c0_i32_0 : i32, i32
  }
  func.func @transform_4(%arg0: i32) -> (i32, i32) {
    %c0_i32 = arith.constant 0 : i32
    %c0_i32_0 = arith.constant 0 : i32
    %c0_i32_1 = arith.constant 0 : i32
    return %c0_i32, %c0_i32_0 : i32, i32
  }
  func.func @transform_5(%arg0: i32) -> (i32, i32) {
    %c0_i32 = arith.constant 0 : i32
    %c0_i32_0 = arith.constant 0 : i32
    %c0_i32_1 = arith.constant 0 : i32
    return %c0_i32, %c0_i32_0 : i32, i32
  }
  func.func @transform_6(%arg0: i32) -> (i32, i32) {
    %c0_i32 = arith.constant 0 : i32
    %c0_i32_0 = arith.constant 0 : i32
    %c0_i32_1 = arith.constant 0 : i32
    return %c0_i32, %c0_i32_0 : i32, i32
  }
  func.func @transform_7(%arg0: i32) -> (i32, i32) {
    %c0_i32 = arith.constant 0 : i32
    %c0_i32_0 = arith.constant 0 : i32
    %c0_i32_1 = arith.constant 0 : i32
    return %c0_i32, %c0_i32_0 : i32, i32
  }
  func.func @transform_8(%arg0: i32) -> (i32, i32) {
    %c0_i32 = arith.constant 0 : i32
    %c0_i32_0 = arith.constant 0 : i32
    %c0_i32_1 = arith.constant 0 : i32
    return %c0_i32, %c0_i32_0 : i32, i32
  }
  func.func @transform_9(%arg0: i32) -> (i32, i32) {
    %c0_i32 = arith.constant 0 : i32
    %c0_i32_0 = arith.constant 0 : i32
    %c0_i32_1 = arith.constant 0 : i32
    return %c0_i32, %c0_i32_0 : i32, i32
  }
  func.func @transform_10(%arg0: i32) -> (i32, i32) {
    %c0_i32 = arith.constant 0 : i32
    %c0_i32_0 = arith.constant 0 : i32
    return %arg0, %c0_i32 : i32, i32
  }
}

module attributes {stable_mosaic.version = 11 : i64} {
  func.func @latent_unet_kernel(%arg0: i32, %arg1: memref<8x128xbf16, #tpu.memory_space<vmem>>, %arg2: memref<8x768xbf16, #tpu.memory_space<vmem>>, %arg3: memref<768x128xbf16, #tpu.memory_space<vmem>>, %arg4: memref<1x128xf32, #tpu.memory_space<vmem>>, %arg5: memref<128x512xbf16, #tpu.memory_space<vmem>>, %arg6: memref<1x512xf32, #tpu.memory_space<vmem>>, %arg7: memref<512x512xbf16, #tpu.memory_space<vmem>>, %arg8: memref<1x512xf32, #tpu.memory_space<vmem>>, %arg9: memref<512x128xbf16, #tpu.memory_space<vmem>>, %arg10: memref<1x128xf32, #tpu.memory_space<vmem>>, %arg11: memref<8x128xf32, #tpu.memory_space<vmem>>) attributes {dimension_semantics = [#tpu.dimension_semantics<parallel>], iteration_bounds = array<i64: 1>, scalar_prefetch = 0 : i64, scratch_operands = 0 : i64, tpu.core_type = #tpu.core_type<tc>, window_params = [{transform_indices = @transform_0, window_bounds = array<i64: 8, 128>}, {transform_indices = @transform_1, window_bounds = array<i64: 8, 768>}, {pipeline_mode = #tpu.pipeline_mode<synchronous>, transform_indices = @transform_2, window_bounds = array<i64: 768, 128>}, {pipeline_mode = #tpu.pipeline_mode<synchronous>, transform_indices = @transform_3, window_bounds = array<i64: 1, 128>}, {pipeline_mode = #tpu.pipeline_mode<synchronous>, transform_indices = @transform_4, window_bounds = array<i64: 128, 512>}, {pipeline_mode = #tpu.pipeline_mode<synchronous>, transform_indices = @transform_5, window_bounds = array<i64: 1, 512>}, {pipeline_mode = #tpu.pipeline_mode<synchronous>, transform_indices = @transform_6, window_bounds = array<i64: 512, 512>}, {pipeline_mode = #tpu.pipeline_mode<synchronous>, transform_indices = @transform_7, window_bounds = array<i64: 1, 512>}, {pipeline_mode = #tpu.pipeline_mode<synchronous>, transform_indices = @transform_8, window_bounds = array<i64: 512, 128>}, {pipeline_mode = #tpu.pipeline_mode<synchronous>, transform_indices = @transform_9, window_bounds = array<i64: 1, 128>}, {transform_indices = @transform_10, window_bounds = array<i64: 8, 128>}]} {
    %c0 = arith.constant 0 : index
    %c0_0 = arith.constant 0 : index
    %0 = vector.load %arg2[%c0, %c0_0] : memref<8x768xbf16, #tpu.memory_space<vmem>>, vector<8x768xbf16>
    %c0_1 = arith.constant 0 : index
    %c0_2 = arith.constant 0 : index
    %1 = vector.load %arg3[%c0_1, %c0_2] : memref<768x128xbf16, #tpu.memory_space<vmem>>, vector<768x128xbf16>
    %cst = arith.constant dense<0.000000e+00> : vector<8x128xf32>
    %2 = tpu.matmul %0, %1, %cst {dimension_numbers = #tpu.dot_dimension_numbers<[1], [0], [0], [1], [0, 0, 1, 1], [], []>} : vector<8x768xbf16>, vector<768x128xbf16>, vector<8x128xf32> -> vector<8x128xf32>
    %c0_3 = arith.constant 0 : index
    %c0_4 = arith.constant 0 : index
    %3 = vector.load %arg4[%c0_3, %c0_4] : memref<1x128xf32, #tpu.memory_space<vmem>>, vector<1x128xf32>
    %4 = vector.broadcast %3 : vector<1x128xf32> to vector<8x128xf32>
    %5 = arith.addf %2, %4 : vector<8x128xf32>
    %c0_5 = arith.constant 0 : index
    %c0_6 = arith.constant 0 : index
    %6 = vector.load %arg1[%c0_5, %c0_6] : memref<8x128xbf16, #tpu.memory_space<vmem>>, vector<8x128xbf16>
    %7 = arith.extf %6 : vector<8x128xbf16> to vector<8x128xf32>
    %8 = arith.addf %7, %5 : vector<8x128xf32>
    %9 = arith.truncf %8 : vector<8x128xf32> to vector<8x128xbf16>
    %c0_7 = arith.constant 0 : index
    %c0_8 = arith.constant 0 : index
    %10 = vector.load %arg5[%c0_7, %c0_8] : memref<128x512xbf16, #tpu.memory_space<vmem>>, vector<128x512xbf16>
    %cst_9 = arith.constant dense<0.000000e+00> : vector<8x512xf32>
    %11 = tpu.matmul %9, %10, %cst_9 {dimension_numbers = #tpu.dot_dimension_numbers<[1], [0], [0], [1], [0, 0, 1, 1], [], []>} : vector<8x128xbf16>, vector<128x512xbf16>, vector<8x512xf32> -> vector<8x512xf32>
    %c0_10 = arith.constant 0 : index
    %c0_11 = arith.constant 0 : index
    %12 = vector.load %arg6[%c0_10, %c0_11] : memref<1x512xf32, #tpu.memory_space<vmem>>, vector<1x512xf32>
    %13 = vector.broadcast %12 : vector<1x512xf32> to vector<8x512xf32>
    %14 = arith.addf %11, %13 : vector<8x512xf32>
    %cst_12 = arith.constant 0.000000e+00 : f32
    %15 = vector.broadcast %cst_12 : f32 to vector<8x512xf32>
    %16 = arith.maximumf %14, %15 : vector<8x512xf32>
    %17 = arith.truncf %16 : vector<8x512xf32> to vector<8x512xbf16>
    %c0_13 = arith.constant 0 : index
    %c0_14 = arith.constant 0 : index
    %18 = vector.load %arg7[%c0_13, %c0_14] : memref<512x512xbf16, #tpu.memory_space<vmem>>, vector<512x512xbf16>
    %cst_15 = arith.constant dense<0.000000e+00> : vector<8x512xf32>
    %19 = tpu.matmul %17, %18, %cst_15 {dimension_numbers = #tpu.dot_dimension_numbers<[1], [0], [0], [1], [0, 0, 1, 1], [], []>} : vector<8x512xbf16>, vector<512x512xbf16>, vector<8x512xf32> -> vector<8x512xf32>
    %c0_16 = arith.constant 0 : index
    %c0_17 = arith.constant 0 : index
    %20 = vector.load %arg8[%c0_16, %c0_17] : memref<1x512xf32, #tpu.memory_space<vmem>>, vector<1x512xf32>
    %21 = vector.broadcast %20 : vector<1x512xf32> to vector<8x512xf32>
    %22 = arith.addf %19, %21 : vector<8x512xf32>
    %cst_18 = arith.constant 0.000000e+00 : f32
    %23 = vector.broadcast %cst_18 : f32 to vector<8x512xf32>
    %24 = arith.maximumf %22, %23 : vector<8x512xf32>
    %25 = arith.truncf %24 : vector<8x512xf32> to vector<8x512xbf16>
    %c0_19 = arith.constant 0 : index
    %c0_20 = arith.constant 0 : index
    %26 = vector.load %arg9[%c0_19, %c0_20] : memref<512x128xbf16, #tpu.memory_space<vmem>>, vector<512x128xbf16>
    %cst_21 = arith.constant dense<0.000000e+00> : vector<8x128xf32>
    %27 = tpu.matmul %25, %26, %cst_21 {dimension_numbers = #tpu.dot_dimension_numbers<[1], [0], [0], [1], [0, 0, 1, 1], [], []>} : vector<8x512xbf16>, vector<512x128xbf16>, vector<8x128xf32> -> vector<8x128xf32>
    %c0_22 = arith.constant 0 : index
    %c0_23 = arith.constant 0 : index
    %28 = vector.load %arg10[%c0_22, %c0_23] : memref<1x128xf32, #tpu.memory_space<vmem>>, vector<1x128xf32>
    %29 = vector.broadcast %28 : vector<1x128xf32> to vector<8x128xf32>
    %30 = arith.addf %27, %29 : vector<8x128xf32>
    %c0_24 = arith.constant 0 : index
    %c0_25 = arith.constant 0 : index
    %31 = vector.load %arg11[%c0_24, %c0_25] : memref<8x128xf32, #tpu.memory_space<vmem>>, vector<8x128xf32>
    tpu.vector_store %arg11[%c0_24, %c0_25], %30 {strides = array<i32>} : memref<8x128xf32, #tpu.memory_space<vmem>>, vector<8x128xf32>,
    return
  }
  func.func @transform_0(%arg0: i32) -> (i32, i32) {
    %c0_i32 = arith.constant 0 : i32
    %c0_i32_0 = arith.constant 0 : i32
    return %arg0, %c0_i32 : i32, i32
  }
  func.func @transform_1(%arg0: i32) -> (i32, i32) {
    %c0_i32 = arith.constant 0 : i32
    %c0_i32_0 = arith.constant 0 : i32
    return %arg0, %c0_i32 : i32, i32
  }
  func.func @transform_2(%arg0: i32) -> (i32, i32) {
    %c0_i32 = arith.constant 0 : i32
    %c0_i32_0 = arith.constant 0 : i32
    %c0_i32_1 = arith.constant 0 : i32
    return %c0_i32, %c0_i32_0 : i32, i32
  }
  func.func @transform_3(%arg0: i32) -> (i32, i32) {
    %c0_i32 = arith.constant 0 : i32
    %c0_i32_0 = arith.constant 0 : i32
    %c0_i32_1 = arith.constant 0 : i32
    return %c0_i32, %c0_i32_0 : i32, i32
  }
  func.func @transform_4(%arg0: i32) -> (i32, i32) {
    %c0_i32 = arith.constant 0 : i32
    %c0_i32_0 = arith.constant 0 : i32
    %c0_i32_1 = arith.constant 0 : i32
    return %c0_i32, %c0_i32_0 : i32, i32
  }
  func.func @transform_5(%arg0: i32) -> (i32, i32) {
    %c0_i32 = arith.constant 0 : i32
    %c0_i32_0 = arith.constant 0 : i32
    %c0_i32_1 = arith.constant 0 : i32
    return %c0_i32, %c0_i32_0 : i32, i32
  }
  func.func @transform_6(%arg0: i32) -> (i32, i32) {
    %c0_i32 = arith.constant 0 : i32
    %c0_i32_0 = arith.constant 0 : i32
    %c0_i32_1 = arith.constant 0 : i32
    return %c0_i32, %c0_i32_0 : i32, i32
  }
  func.func @transform_7(%arg0: i32) -> (i32, i32) {
    %c0_i32 = arith.constant 0 : i32
    %c0_i32_0 = arith.constant 0 : i32
    %c0_i32_1 = arith.constant 0 : i32
    return %c0_i32, %c0_i32_0 : i32, i32
  }
  func.func @transform_8(%arg0: i32) -> (i32, i32) {
    %c0_i32 = arith.constant 0 : i32
    %c0_i32_0 = arith.constant 0 : i32
    %c0_i32_1 = arith.constant 0 : i32
    return %c0_i32, %c0_i32_0 : i32, i32
  }
  func.func @transform_9(%arg0: i32) -> (i32, i32) {
    %c0_i32 = arith.constant 0 : i32
    %c0_i32_0 = arith.constant 0 : i32
    %c0_i32_1 = arith.constant 0 : i32
    return %c0_i32, %c0_i32_0 : i32, i32
  }
  func.func @transform_10(%arg0: i32) -> (i32, i32) {
    %c0_i32 = arith.constant 0 : i32
    %c0_i32_0 = arith.constant 0 : i32
    return %arg0, %c0_i32 : i32, i32
  }
}

</mosaic_0001>

<bundles_post_ra>
// kernel: latent_unet_forward.1
= control target key start
LH: loop header
LB: loop body
LE: loop exit
PB: predicated region body
PF: predicated region fallthrough
CT: control target
= control target key end

     0   :  { %15 = vsyncpa [#allocation3], 0  ;;  %s3200_s0 = inlined_call_operand.vmem [shape: bf16[8,128], index: 0, kind: input, shape index: {}]   ;;  %s3201_s1 = inlined_call_operand.vmem [shape: bf16[8,768], index: 1, kind: input, shape index: {}]   ;;  %s3202_s2 = inlined_call_operand.hbm [shape: bf16[768,128], index: 2, kind: input, shape index: {}]   ;;  %s3203_s3 = inlined_call_operand.vmem [shape: f32[1,128], index: 3, kind: input, shape index: {}]   ;;  %s3204_s4 = inlined_call_operand.hbm [shape: bf16[128,512], index: 4, kind: input, shape index: {}]   ;;  %s3205_s5 = inlined_call_operand.vmem [shape: f32[1,512], index: 5, kind: input, shape index: {}]   ;;  %s3206_s6 = inlined_call_operand.hbm [shape: bf16[512,512], index: 6, kind: input, shape index: {}]   ;;  %s3207_s7 = inlined_call_operand.vmem [shape: f32[1,512], index: 7, kind: input, shape index: {}]   ;;  %s3208_s8 = inlined_call_operand.hbm [shape: bf16[512,128], index: 8, kind: input, shape index: {}]   ;;  %s3209_s9 = inlined_call_operand.vmem [shape: f32[1,128], index: 9, kind: input, shape index: {}]   ;;  %s3210_s10 = inlined_call_operand.hbm [shape: f32[8,128], index: 10, kind: output, shape index: {}]  }
   0x1   :  { %16 = vsyncpa [#allocation6], 0 }
   0x2   :  { %17 = vsyncpa [#allocation9], 0 }
   0x3   :  { %18 = vsyncpa [#allocation4], 0  ;;  %s3060_s13 = smov [#allocation5]  }
   0x4   :  { %s42_s14 = sshll.u32 %s3060_s13, 4  ;;  %s43_s14 = int_to_ptr.vmem [resolvable:$true] %s42_s14 }
   0x5   :  { %s2960_s15 = scalar_lea.vmem %s43_s14, 4096  ;;  %p2965_p1 = scmp.lt.s32.totalorder %s43_s14, %s43_s14 }
   0x6   :  { %p2961_p0 = scmp.ne.s32.totalorder %s43_s14, %s2960_s15  ;;  %p2966_p2 = scmp.lt.s32.totalorder %s2960_s15, %s2960_s15 }
   0x8   :  { %p2967_p3 = por %p2966_p2, %p2965_p1 }
   0xa   :  { %p2968_p4 = pnand %p2967_p3, %p2961_p0 }
   0xc   :  { %2971 = shalt.err (!%p2968_p4)
}
   0xd   :  { %s3061_s16 = smov 256   ;;  %s3062_s17 = smov 16  }
   0xe   :  { %48 = dma.hbm_to_vmem [thread:$0]  %s3204_s4, 4096, %s43_s14, [#allocation6], %s3061_s16, %s3061_s16, %s3062_s17  }
   0xf   :  { %s3063_s20 = smov [#allocation2]  }
  0x10   :  { %s28_s21 = sshll.u32 %s3063_s20, 4  ;;  %s29_s21 = int_to_ptr.vmem [resolvable:$true] %s28_s21 }
  0x11   :  { %s2980_s22 = scalar_lea.vmem %s29_s21, 6144  ;;  %p2985_p6 = scmp.lt.s32.totalorder %s29_s21, %s29_s21 }
  0x12   :  { %p2981_p5 = scmp.ne.s32.totalorder %s29_s21, %s2980_s22  ;;  %p2986_p7 = scmp.lt.s32.totalorder %s2980_s22, %s2980_s22 }
  0x14   :  { %p2987_p8 = por %p2986_p7, %p2985_p6 }
  0x16   :  { %p2988_p9 = pnand %p2987_p8, %p2981_p5 }
  0x18   :  { %2991 = shalt.err (!%p2988_p9)
}
  0x19   :  { %s3064_s23 = smov 64   ;;  %s3065_s24 = smov 4  }
  0x1a   :  { %34 = dma.hbm_to_vmem [thread:$0]  %s3202_s2, 6144, %s29_s21, [#allocation3], %s3064_s23, %s3064_s23, %s3065_s24  }
  0x1b   :  { %s3066_s27 = smov [#allocation7]   ;;  %s3067_s29 = smov [#allocation8]  }
  0x1c   :  { %s56_s28 = sshll.u32 %s3066_s27, 4  ;;  %s70_s4 = sshll.u32 %s3067_s29, 4  ;;  %s57_s28 = int_to_ptr.vmem [resolvable:$true] %s56_s28  ;;  %s71_s4 = int_to_ptr.vmem [resolvable:$true] %s70_s4 }
  0x1d   :  { %s3000_s30 = scalar_lea.vmem %s57_s28, 16384  ;;  %p3005_p11 = scmp.lt.s32.totalorder %s57_s28, %s57_s28 }
  0x1e   :  { %p3001_p10 = scmp.ne.s32.totalorder %s57_s28, %s3000_s30  ;;  %p3006_p12 = scmp.lt.s32.totalorder %s3000_s30, %s3000_s30 }
  0x20   :  { %p3007_p13 = por %p3006_p12, %p3005_p11 }
  0x22   :  { %p3008_p0 = pnand %p3007_p13, %p3001_p10 }
  0x24   :  { %3011 = shalt.err (!%p3008_p0)
}
  0x25   :  { %62 = dma.hbm_to_vmem [thread:$0]  %s3206_s6, 16384, %s57_s28, [#allocation6], %s3061_s16, %s3061_s16, %s3062_s17  }
  0x26   :  { %s3020_s2 = scalar_lea.vmem %s71_s4, 4096  ;;  %p3025_p2 = scmp.lt.s32.totalorder %s71_s4, %s71_s4 }
  0x27   :  { %p3021_p1 = scmp.ne.s32.totalorder %s71_s4, %s3020_s2  ;;  %p3026_p3 = scmp.lt.s32.totalorder %s3020_s2, %s3020_s2 }
  0x29   :  { %p3027_p4 = por %p3026_p3, %p3025_p2 }
  0x2b   :  { %p3028_p5 = pnand %p3027_p4, %p3021_p1 }
  0x2d   :  { %3031 = shalt.err (!%p3028_p5)
}
  0x2e   :  { %76 = dma.hbm_to_vmem [thread:$0]  %s3208_s8, 4096, %s71_s4, [#allocation9], %s3064_s23, %s3064_s23, %s3065_s24  }
  0x2f   :  { %3052 = dma.done.wait [#allocation3], 6144  }
  0x30   :  { %3053 = vsyncadd [#allocation3], 4294961152 }
  0x31   :  { %3054 = dma.done.wait [#allocation6], 20480  }
  0x32   :  { %3055 = vsyncadd [#allocation6], 4294946816 }
  0x33   :  { %3056 = dma.done.wait [#allocation9], 4096  }
  0x34   :  { %3057 = vsyncadd [#allocation9], 4294963200  ;;  %v2626_v0 = vld [vmem:[#allocation2 + $0x78] sm:$0xff]   ;;  %v2630_v4 = vld [vmem:[#allocation2 + $0x70] sm:$0xff]   ;;  %s3069_s24 = smov [#allocation10]  }
  0x35   :  { %v2627_v1 = vld [vmem:[#allocation2 + $0x38] sm:$0xff]   ;;  %2506 = vmatprep.subr.bf16.mxu0 %v2626_v0  ;;  %v2631_v5 = vld [vmem:[#allocation2 + $0x30] sm:$0xff]   ;;  %v2634_v8 = vld [vmem:[#allocation2 + $0x68] sm:$0xff]   ;;  %s2247_s25 = sshll.u32 %s3069_s24, 4  ;;  %s2248_s25 = int_to_ptr.vmem [resolvable:$true] %s2247_s25 }
  0x36   :  { %v2628_v2 = vld [vmem:[#allocation2 + $0xf8] sm:$0xff]   ;;  %2507 = vmatpush3.bf16.msra.mxu0 %v2627_v1  ;;  %v2632_v6 = vld [vmem:[#allocation2 + $0xf0] sm:$0xff]   ;;  %v2635_v9 = vld [vmem:[#allocation2 + $0x28] sm:$0xff]   ;;  %s3032_s26 = scalar_lea.vmem %s2248_s25, 128  ;;  %p3037_p7 = scmp.lt.s32.totalorder %s2248_s25, %s2248_s25 }
  0x37   :  { %v2629_v3 = vld [vmem:[#allocation2 + $0xb8] sm:$0xff]   ;;  %2528 = vmatprep.subr.bf16.mxu1 %v2628_v2  ;;  %2508 = vmatprep.subr.bf16.mxu0 %v2630_v4  ;;  %v2633_v7 = vld [vmem:[#allocation2 + $0xb0] sm:$0xff]   ;;  %v2636_v10 = vld [vmem:[#allocation2 + $0xe8] sm:$0xff]   ;;  %p3033_p6 = scmp.ne.s32.totalorder %s2248_s25, %s3032_s26  ;;  %p3038_p8 = scmp.lt.s32.totalorder %s3032_s26, %s3032_s26 }
  0x38   :  { %2529 = vmatpush3.bf16.msra.mxu1 %v2629_v3  ;;  %v2637_v11 = vld [vmem:[#allocation2 + $0xa8] sm:$0xff]   ;;  %v2638_v12 = vld [vmem:[#allocation2 + $0x60] sm:$0xff]   ;;  %v2642_v16 = vld [vmem:[#allocation2 + $0x58] sm:$0xff]  }
  0x39   :  { %2530 = vmatprep.subr.bf16.mxu1 %v2632_v6  ;;  %v2639_v13 = vld [vmem:[#allocation2 + $0x20] sm:$0xff]   ;;  %v2643_v17 = vld [vmem:[#allocation2 + $0x18] sm:$0xff]   ;;  %v2646_v20 = vld [vmem:[#allocation2 + $0x50] sm:$0xff]   ;;  %p3039_p9 = por %p3038_p8, %p3037_p7 }
  0x3a   :  { %2509 = vmatpush3.bf16.msra.mxu0 %v2631_v5  ;;  %v2640_v14 = vld [vmem:[#allocation2 + $0xe0] sm:$0xff]   ;;  %v2644_v18 = vld [vmem:[#allocation2 + $0xd8] sm:$0xff]   ;;  %v2647_v21 = vld [vmem:[#allocation2 + $0x10] sm:$0xff]  }
  0x3b   :  { %2510 = vmatprep.subr.bf16.mxu0 %v2634_v8  ;;  %v2641_v15 = vld [vmem:[#allocation2 + $0xa0] sm:$0xff]   ;;  %v2645_v19 = vld [vmem:[#allocation2 + $0x98] sm:$0xff]   ;;  %v2648_v22 = vld [vmem:[#allocation2 + $0xd0] sm:$0xff]   ;;  %p3040_p10 = pnand %p3039_p9, %p3033_p6 }
  0x3c   :  { %2531 = vmatpush3.bf16.msra.mxu1 %v2633_v7  ;;  %v2649_v23 = vld [vmem:[#allocation2 + $0x90] sm:$0xff]   ;;  %v2650_v24 = vld [vmem:[#allocation2 + $0x48] sm:$0xff]   ;;  %v2654_v28 = vld [vmem:[#allocation2 + $0x40] sm:$0xff]  }
  0x3d   :  { %2532 = vmatprep.subr.bf16.mxu1 %v2636_v10  ;;  %v2651_v25 = vld [vmem:[#allocation2 + $0x8] sm:$0xff]   ;;  %v2655_v29 = vld [vmem:[#allocation2] sm:$0xff]   ;;  %v2660_v35 = vld [vmem:[#allocation2 + $0x178] sm:$0xff]  }
  0x3e   :  { %2511 = vmatpush3.bf16.msra.mxu0 %v2635_v9  ;;  %v2652_v26 = vld [vmem:[#allocation2 + $0xc8] sm:$0xff]   ;;  %v2656_v30 = vld [vmem:[#allocation2 + $0xc0] sm:$0xff]   ;;  %v2663_v39 = vld [vmem:[#allocation2 + $0x138] sm:$0xff]  }
  0x3f   :  { %2512 = vmatprep.subr.bf16.mxu0 %v2638_v12  ;;  %v2653_v27 = vld [vmem:[#allocation2 + $0x88] sm:$0xff]   ;;  %v92_v31 = vld [vmem:[%s3201_s1] sm:$0xff]  ;;  %v2664_v40 = vld [vmem:[#allocation2 + $0x170] sm:$0xff]  }
  0x40   :  { %2533 = vmatpush3.bf16.msra.mxu1 %v2637_v11  ;;  %v2259_v32 = vcombine.low %v92_v31, %v92_v31  ;;  %v2260_v33 = vcombine.high %v92_v31, %v92_v31  ;;  %v2659_v34 = vld [vmem:[#allocation2 + $0x80] sm:$0xff]   ;;  %v93_v36 = vld [vmem:[%s3201_s1 + $0x8] sm:$0xff]  ;;  %v2665_v41 = vld [vmem:[#allocation2 + $0x130] sm:$0xff]  }
  0x41   :  { %2534 = vmatprep.subr.bf16.mxu1 %v2640_v14  ;;  %v2261_v37 = vcombine.low %v93_v36, %v93_v36  ;;  %v2262_v38 = vcombine.high %v93_v36, %v93_v36  ;;  %v2666_v42 = vld [vmem:[#allocation2 + $0x168] sm:$0xff]   ;;  %v2668_v44 = vld [vmem:[#allocation2 + $0x160] sm:$0xff]   ;;  %v2670_v46 = vld [vmem:[#allocation2 + $0x158] sm:$0xff]  }
  0x42   :  { %2513 = vmatpush3.bf16.msra.mxu0 %v2639_v13  ;;  %539 = vmatprep.mubr.bf16.mxu0 %v2260_v33  ;;  %v2667_v43 = vld [vmem:[#allocation2 + $0x128] sm:$0xff]   ;;  %v2669_v45 = vld [vmem:[#allocation2 + $0x120] sm:$0xff]   ;;  %v2671_v47 = vld [vmem:[#allocation2 + $0x118] sm:$0xff]  }
  0x43   :  { %2514 = vmatprep.subr.bf16.mxu0 %v2642_v16  ;;  %579 = vmatprep.mubr.bf16.mxu1 %v2262_v38  ;;  %v2672_v48 = vld [vmem:[#allocation2 + $0x150] sm:$0xff]   ;;  %v2674_v52 = vld [vmem:[#allocation2 + $0x148] sm:$0xff]   ;;  %v2676_v54 = vld [vmem:[#allocation2 + $0x140] sm:$0xff]  }
  0x44   :  { %2535 = vmatpush3.bf16.msra.mxu1 %v2641_v15  ;;  %v94_v49 = vld [vmem:[%s3201_s1 + $0x10] sm:$0xff]  ;;  %v2675_v53 = vld [vmem:[#allocation2 + $0x108] sm:$0xff]   ;;  %v2677_v55 = vld [vmem:[#allocation2 + $0x100] sm:$0xff]  }
  0x45   :  { %2536 = vmatprep.subr.bf16.mxu1 %v2644_v18  ;;  %v2264_v50 = vcombine.high %v94_v49, %v94_v49  ;;  %v2673_v51 = vld [vmem:[#allocation2 + $0x110] sm:$0xff]   ;;  %v2263_v56 = vcombine.low %v94_v49, %v94_v49  ;;  %v2683_v59 = vld [vmem:[#allocation5 + $0xe8] ss:$16 sps:$4 sm:$0xff]   ;;  %v2685_v60 = vld [vmem:[#allocation5 + $0xec] ss:$16 sps:$4 sm:$0xff]  }
  0x46   :  { %2515 = vmatpush3.bf16.msra.mxu0 %v2643_v17  ;;  %v2680_v57 = vld [vmem:[#allocation5 + $0xe0] ss:$16 sps:$4 sm:$0xff]   ;;  %v2682_v58 = vld [vmem:[#allocation5 + $0xe4] ss:$16 sps:$4 sm:$0xff]   ;;  %v2691_v62 = vld [vmem:[#allocation5 + $0xcc] ss:$16 sps:$4 sm:$0xff]  }
  0x47   :  { %2516 = vmatprep.subr.bf16.mxu0 %v2646_v20  ;;  %v2688_v61 = vld [vmem:[#allocation5 + $0xc4] ss:$16 sps:$4 sm:$0xff]   ;;  %v2686_v63 = vld [vmem:[#allocation5 + $0xc0] ss:$16 sps:$4 sm:$0xff]   ;;  %v2689_v0 = vld [vmem:[#allocation5 + $0xc8] ss:$16 sps:$4 sm:$0xff]  }
  0x48   :  { %2537 = vmatpush3.bf16.msra.mxu1 %v2645_v19  ;;  %v2694_v1 = vld [vmem:[#allocation5 + $0xa4] ss:$16 sps:$4 sm:$0xff]   ;;  %v2697_v2 = vld [vmem:[#allocation5 + $0xac] ss:$16 sps:$4 sm:$0xff]   ;;  %v2692_v3 = vld [vmem:[#allocation5 + $0xa0] ss:$16 sps:$4 sm:$0xff]  }
  0x49   :  { %2538 = vmatprep.subr.bf16.mxu1 %v2648_v22  ;;  %v2695_v4 = vld [vmem:[#allocation5 + $0xa8] ss:$16 sps:$4 sm:$0xff]   ;;  %v2700_v5 = vld [vmem:[#allocation5 + $0x84] ss:$16 sps:$4 sm:$0xff]   ;;  %v2703_v6 = vld [vmem:[#allocation5 + $0x8c] ss:$16 sps:$4 sm:$0xff]  }
  0x4a   :  { %2517 = vmatpush3.bf16.msra.mxu0 %v2647_v21  ;;  %v2698_v7 = vld [vmem:[#allocation5 + $0x80] ss:$16 sps:$4 sm:$0xff]   ;;  %v2701_v8 = vld [vmem:[#allocation5 + $0x88] ss:$16 sps:$4 sm:$0xff]   ;;  %v2706_v9 = vld [vmem:[#allocation5 + $0x64] ss:$16 sps:$4 sm:$0xff]  }
  0x4b   :  { %2518 = vmatprep.subr.bf16.mxu0 %v2650_v24  ;;  %v2709_v10 = vld [vmem:[#allocation5 + $0x6c] ss:$16 sps:$4 sm:$0xff]   ;;  %v2704_v11 = vld [vmem:[#allocation5 + $0x60] ss:$16 sps:$4 sm:$0xff]   ;;  %v2707_v12 = vld [vmem:[#allocation5 + $0x68] ss:$16 sps:$4 sm:$0xff]  }
  0x4c   :  { %2539 = vmatpush3.bf16.msra.mxu1 %v2649_v23  ;;  %v2712_v13 = vld [vmem:[#allocation5 + $0x44] ss:$16 sps:$4 sm:$0xff]   ;;  %v2715_v14 = vld [vmem:[#allocation5 + $0x4c] ss:$16 sps:$4 sm:$0xff]   ;;  %v2710_v15 = vld [vmem:[#allocation5 + $0x40] ss:$16 sps:$4 sm:$0xff]  }
  0x4d   :  { %2540 = vmatprep.subr.bf16.mxu1 %v2652_v26  ;;  %v2713_v16 = vld [vmem:[#allocation5 + $0x48] ss:$16 sps:$4 sm:$0xff]   ;;  %v2718_v17 = vld [vmem:[#allocation5 + $0x24] ss:$16 sps:$4 sm:$0xff]   ;;  %v2721_v18 = vld [vmem:[#allocation5 + $0x2c] ss:$16 sps:$4 sm:$0xff]  }
  0x4e   :  { %2519 = vmatpush3.bf16.msra.mxu0 %v2651_v25  ;;  %v2716_v19 = vld [vmem:[#allocation5 + $0x20] ss:$16 sps:$4 sm:$0xff]   ;;  %v2719_v20 = vld [vmem:[#allocation5 + $0x28] ss:$16 sps:$4 sm:$0xff]   ;;  %v2724_v21 = vld [vmem:[#allocation5 + $0x4] ss:$16 sps:$4 sm:$0xff]  }
  0x4f   :  { %2520 = vmatprep.subr.bf16.mxu0 %v2654_v28  ;;  %v2727_v22 = vld [vmem:[#allocation5 + $0xc] ss:$16 sps:$4 sm:$0xff]   ;;  %v2722_v23 = vld [vmem:[#allocation5] ss:$16 sps:$4 sm:$0xff]   ;;  %v2725_v24 = vld [vmem:[#allocation5 + $0x8] ss:$16 sps:$4 sm:$0xff]  }
  0x50   :  { %2541 = vmatpush3.bf16.msra.mxu1 %v2653_v27  ;;  %v3068_v25 = vmov 0   ;;  %v2730_v26 = vld [vmem:[#allocation7 + $0xe4] ss:$16 sps:$4 sm:$0xff]  }
  0x51   :  { %2542 = vmatprep.subr.bf16.mxu1 %v2656_v30  ;;  %v2733_v27 = vld [vmem:[#allocation7 + $0x2e4] ss:$16 sps:$4 sm:$0xff]  }
  0x52   :  { %2521 = vmatpush3.bf16.msra.mxu0 %v2655_v29 }
  0x53   :  { %2550 = vmatprep.subr.bf16.mxu0 %v2660_v35 }
  0x54   :  { %2543 = vmatpush3.bf16.msra.mxu1 %v2659_v34 }
  0x55   :  { %540 = vmatmul.mubr.bf16.vlgmr.msra.gmra.mxu0 %v2259_v32  ;;  %845 = vmatprep.subr.bf16.mxu1 %v2682_v58  ;;  %v2745_v58 = vld [vmem:[#allocation7 + $0x2a4] ss:$16 sps:$4 sm:$0xff]  }
  0x56   :  { %2551 = vmatpush3.bf16.msra.mxu0 %v2663_v39  ;;  %619 = vmatprep.mubr.bf16.mxu0 %v2264_v50  ;;  %v2728_v50 = vld [vmem:[#allocation7 + $0xe0] ss:$16 sps:$4 sm:$0xff]  }
  0x57   :  { %580 = vmatmul.mubr.bf16.vlgmr.msra.gmra.mxu1 %v2261_v37  ;;  %2552 = vmatprep.subr.bf16.mxu0 %v2664_v40  ;;  %v2258_v37 = vld [vmem:[%s3203_s3] ss:$0 sm:$0xff] }
  0x58   :  { %846 = vmatpush1.bf16.msra.mxu1 %v2680_v57  ;;  %877 = vmatprep.mubr.bf16.mxu1 %v3068_v25  ;;  %v2742_v57 = vld [vmem:[#allocation7 + $0xa4] ss:$16 sps:$4 sm:$0xff]  }
  0x59   :  { %847 = vmatprep.subr.bf16.mxu1 %v2688_v61  ;;  %v2748_v61 = vld [vmem:[#allocation7 + $0x84] ss:$16 sps:$4 sm:$0xff]  }
  0x5a   :  { %2553 = vmatpush3.bf16.msra.mxu0 %v2665_v41  ;;  %v627_v41 = vld [vmem:[%s3200_s0] sm:$0xf] }
  0x5b   :  { %2554 = vmatprep.subr.bf16.mxu0 %v2666_v42 }
  0x5c   :  { %848 = vmatpush1.bf16.msra.mxu1 %v2686_v63  ;;  %v2746_v63 = vld [vmem:[#allocation7 + $0x80] ss:$16 sps:$4 sm:$0xff]  }
  0x5d   :  { %849 = vmatprep.subr.bf16.mxu1 %v2694_v1  ;;  %v2754_v1 = vld [vmem:[#allocation7 + $0x64] ss:$16 sps:$4 sm:$0xff]  }
  0x5e   :  { %2555 = vmatpush3.bf16.msra.mxu0 %v2667_v43 }
  0x5f   :  { %2556 = vmatprep.subr.bf16.mxu0 %v2668_v44 }
  0x60   :  { %850 = vmatpush1.bf16.msra.mxu1 %v2692_v3  ;;  %v2752_v3 = vld [vmem:[#allocation7 + $0x60] ss:$16 sps:$4 sm:$0xff]  }
  0x61   :  { %851 = vmatprep.subr.bf16.mxu1 %v2700_v5  ;;  %v2760_v5 = vld [vmem:[#allocation7 + $0x44] ss:$16 sps:$4 sm:$0xff]  }
  0x62   :  { %2557 = vmatpush3.bf16.msra.mxu0 %v2669_v45  ;;  %v628_v45 = vunpack.c.l.bf16 %v627_v41  ;;  %v2814_v41 = vld [vmem:[#allocation7 + $0x124] ss:$16 sps:$4 sm:$0xff]  }
  0x63   :  { %2558 = vmatprep.subr.bf16.mxu0 %v2670_v46 }
  0x64   :  { %852 = vmatpush1.bf16.msra.mxu1 %v2698_v7  ;;  %v2758_v7 = vld [vmem:[#allocation7 + $0x40] ss:$16 sps:$4 sm:$0xff]  }
  0x65   :  { %853 = vmatprep.subr.bf16.mxu1 %v2706_v9  ;;  %v2766_v9 = vld [vmem:[#allocation7 + $0x24] ss:$16 sps:$4 sm:$0xff]  }
  0x66   :  { %2559 = vmatpush3.bf16.msra.mxu0 %v2671_v47 }
  0x67   :  { %2560 = vmatprep.subr.bf16.mxu0 %v2672_v48 }
  0x68   :  { %854 = vmatpush1.bf16.msra.mxu1 %v2704_v11  ;;  %v2764_v11 = vld [vmem:[#allocation7 + $0x20] ss:$16 sps:$4 sm:$0xff]  }
  0x69   :  { %855 = vmatprep.subr.bf16.mxu1 %v2712_v13  ;;  %v2772_v13 = vld [vmem:[#allocation7 + $0x4] ss:$16 sps:$4 sm:$0xff]  }
  0x6a   :  { %2561 = vmatpush3.bf16.msra.mxu0 %v2673_v51  ;;  %v2731_v51 = vld [vmem:[#allocation7 + $0x2e0] ss:$16 sps:$4 sm:$0xff]  }
  0x6b   :  { %2562 = vmatprep.subr.bf16.mxu0 %v2674_v52 }
  0x6c   :  { %856 = vmatpush1.bf16.msra.mxu1 %v2710_v15  ;;  %v2770_v15 = vld [vmem:[#allocation7] ss:$16 sps:$4 sm:$0xff]  }
  0x6d   :  { %857 = vmatprep.subr.bf16.mxu1 %v2718_v17  ;;  %v2778_v17 = vld [vmem:[#allocation7 + $0x1e4] ss:$16 sps:$4 sm:$0xff]  }
  0x6e   :  { %2563 = vmatpush3.bf16.msra.mxu0 %v2675_v53  ;;  %v2736_v53 = vld [vmem:[#allocation7 + $0xc4] ss:$16 sps:$4 sm:$0xff]  }
  0x6f   :  { %2564 = vmatprep.subr.bf16.mxu0 %v2676_v54  ;;  %v2739_v54 = vld [vmem:[#allocation7 + $0x2c4] ss:$16 sps:$4 sm:$0xff]  }
  0x70   :  { %858 = vmatpush1.bf16.msra.mxu1 %v2716_v19  ;;  %v2776_v19 = vld [vmem:[#allocation7 + $0x1e0] ss:$16 sps:$4 sm:$0xff]  }
  0x71   :  { %859 = vmatprep.subr.bf16.mxu1 %v2724_v21  ;;  %v2784_v21 = vld [vmem:[#allocation7 + $0x1c4] ss:$16 sps:$4 sm:$0xff]  }
  0x72   :  { %2565 = vmatpush3.bf16.msra.mxu0 %v2677_v55  ;;  %v2734_v55 = vld [vmem:[#allocation7 + $0xc0] ss:$16 sps:$4 sm:$0xff]  }
  0x73   :  { %886 = vmatprep.subr.bf16.mxu0 %v2685_v60  ;;  %v2743_v60 = vld [vmem:[#allocation7 + $0x2a0] ss:$16 sps:$4 sm:$0xff]  }
  0x74   :  { %860 = vmatpush1.bf16.msra.mxu1 %v2722_v23  ;;  %v2782_v23 = vld [vmem:[#allocation7 + $0x1c0] ss:$16 sps:$4 sm:$0xff]  }
  0x75   :  { %620 = vmatmul.mubr.bf16.vlgmr.msra.gmra.mxu0 %v2263_v56  ;;  %1725 = vmatprep.subr.bf16.mxu1 %v2730_v26  ;;  %v2737_v56 = vld [vmem:[#allocation7 + $0x2c0] ss:$16 sps:$4 sm:$0xff]   ;;  %v2793_v26 = vld [vmem:[#allocation7 + $0x3a4] ss:$16 sps:$4 sm:$0xff]  }
  0x76   :  { %887 = vmatpush1.bf16.msra.mxu0 %v2683_v59  ;;  %918 = vmatprep.mubr.bf16.mxu0 %v3068_v25  ;;  %v2740_v59 = vld [vmem:[#allocation7 + $0xa0] ss:$16 sps:$4 sm:$0xff]   ;;  %v2790_v25 = vld [vmem:[#allocation7 + $0x1a4] ss:$16 sps:$4 sm:$0xff]  }
  0x77   :  { %888 = vmatprep.subr.bf16.mxu0 %v2691_v62  ;;  %v2751_v62 = vld [vmem:[#allocation7 + $0x284] ss:$16 sps:$4 sm:$0xff]  }
  0x7a   :  { %889 = vmatpush1.bf16.msra.mxu0 %v2689_v0  ;;  %v2749_v0 = vld [vmem:[#allocation7 + $0x280] ss:$16 sps:$4 sm:$0xff]  }
  0x7b   :  { %890 = vmatprep.subr.bf16.mxu0 %v2697_v2  ;;  %v2757_v2 = vld [vmem:[#allocation7 + $0x264] ss:$16 sps:$4 sm:$0xff]  }
  0x7e   :  { %891 = vmatpush1.bf16.msra.mxu0 %v2695_v4  ;;  %v2755_v4 = vld [vmem:[#allocation7 + $0x260] ss:$16 sps:$4 sm:$0xff]  }
  0x7f   :  { %892 = vmatprep.subr.bf16.mxu0 %v2703_v6  ;;  %v2763_v6 = vld [vmem:[#allocation7 + $0x244] ss:$16 sps:$4 sm:$0xff]  }
  0x82   :  { %893 = vmatpush1.bf16.msra.mxu0 %v2701_v8  ;;  %v2761_v8 = vld [vmem:[#allocation7 + $0x240] ss:$16 sps:$4 sm:$0xff]  }
  0x83   :  { %894 = vmatprep.subr.bf16.mxu0 %v2709_v10  ;;  %v2769_v10 = vld [vmem:[#allocation7 + $0x224] ss:$16 sps:$4 sm:$0xff]  }
  0x86   :  { %895 = vmatpush1.bf16.msra.mxu0 %v2707_v12  ;;  %v2767_v12 = vld [vmem:[#allocation7 + $0x220] ss:$16 sps:$4 sm:$0xff]  }
  0x87   :  { %896 = vmatprep.subr.bf16.mxu0 %v2715_v14  ;;  %v2775_v14 = vld [vmem:[#allocation7 + $0x204] ss:$16 sps:$4 sm:$0xff]  }
  0x8a   :  { %897 = vmatpush1.bf16.msra.mxu0 %v2713_v16  ;;  %v2773_v16 = vld [vmem:[#allocation7 + $0x200] ss:$16 sps:$4 sm:$0xff]  }
  0x8b   :  { %898 = vmatprep.subr.bf16.mxu0 %v2721_v18  ;;  %v2781_v18 = vld [vmem:[#allocation7 + $0x3e4] ss:$16 sps:$4 sm:$0xff]  }
  0x8e   :  { %899 = vmatpush1.bf16.msra.mxu0 %v2719_v20  ;;  %v2779_v20 = vld [vmem:[#allocation7 + $0x3e0] ss:$16 sps:$4 sm:$0xff]  }
  0x8f   :  { %900 = vmatprep.subr.bf16.mxu0 %v2727_v22  ;;  %v2787_v22 = vld [vmem:[#allocation7 + $0x3c4] ss:$16 sps:$4 sm:$0xff]  }
  0x92   :  { %901 = vmatpush1.bf16.msra.mxu0 %v2725_v24  ;;  %v2785_v24 = vld [vmem:[#allocation7 + $0x3c0] ss:$16 sps:$4 sm:$0xff]  }
  0x93   :  { %1766 = vmatprep.subr.bf16.mxu0 %v2733_v27  ;;  %v2788_v27 = vld [vmem:[#allocation7 + $0x1a0] ss:$16 sps:$4 sm:$0xff]  }
 0x115   :  { %v2522_v28 = vpop.f32.mrf.mxu0 }
 0x117   :  { %v2523_v29 = vpop.f32.mrf.mxu0  ;;  %v2544_v30 = vpop.f32.mrf.mxu1 }
 0x118   :  { %v2524_v36 = vadd.f32 %v2523_v29, %v2522_v28  ;;  %v2791_v28 = vld [vmem:[#allocation7 + $0x3a0] ss:$16 sps:$4 sm:$0xff]   ;;  %v2796_v29 = vld [vmem:[#allocation7 + $0x184] ss:$16 sps:$4 sm:$0xff]  }
 0x119   :  { %v2525_v31 = vpop.f32.mrf.mxu0  ;;  %v2545_v32 = vpop.f32.mrf.mxu1 }
 0x11a   :  { %v542_v38 = vadd.f32 %v2524_v36, %v2258_v37  ;;  %v2546_v39 = vadd.f32 %v2545_v32, %v2544_v30  ;;  %v2799_v30 = vld [vmem:[#allocation7 + $0x384] ss:$16 sps:$4 sm:$0xff]   ;;  %v2794_v31 = vld [vmem:[#allocation7 + $0x180] ss:$16 sps:$4 sm:$0xff]  }
 0x11b   :  { %v2526_v33 = vpop.f32.mrf.mxu0  ;;  %v2547_v34 = vpop.f32.mrf.mxu1  ;;  %v2797_v32 = vld [vmem:[#allocation7 + $0x380] ss:$16 sps:$4 sm:$0xff]   ;;  %v2808_v37 = vld [vmem:[#allocation7 + $0x144] ss:$16 sps:$4 sm:$0xff]  }
 0x11c   :  { %v582_v43 = vadd.f32 %v2546_v39, %v542_v38  ;;  %v2802_v33 = vld [vmem:[#allocation7 + $0x164] ss:$16 sps:$4 sm:$0xff]   ;;  %v2803_v36 = vld [vmem:[#allocation7 + $0x360] ss:$16 sps:$4 sm:$0xff]  }
 0x11d   :  { %v2548_v35 = vpop.f32.mrf.mxu1  ;;  %v2805_v34 = vld [vmem:[#allocation7 + $0x364] ss:$16 sps:$4 sm:$0xff]   ;;  %v2806_v39 = vld [vmem:[#allocation7 + $0x140] ss:$16 sps:$4 sm:$0xff]  }
 0x11e   :  { %v2800_v35 = vld [vmem:[#allocation7 + $0x160] ss:$16 sps:$4 sm:$0xff]   ;;  %v2811_v38 = vld [vmem:[#allocation7 + $0x344] ss:$16 sps:$4 sm:$0xff]  }
 0x135   :  { %v2566_v40 = vpop.f32.mrf.mxu0 }
 0x137   :  { %v2567_v42 = vpop.f32.mrf.mxu0 }
 0x138   :  { %v2568_v44 = vadd.f32 %v2567_v42, %v2566_v40  ;;  %v2809_v40 = vld [vmem:[#allocation7 + $0x340] ss:$16 sps:$4 sm:$0xff]   ;;  %v2817_v42 = vld [vmem:[#allocation7 + $0x324] ss:$16 sps:$4 sm:$0xff]  }
 0x139   :  { %v2569_v46 = vpop.f32.mrf.mxu0 }
 0x13a   :  { %v622_v47 = vadd.f32 %v2568_v44, %v582_v43  ;;  %v2812_v43 = vld [vmem:[#allocation7 + $0x120] ss:$16 sps:$4 sm:$0xff]   ;;  %v2823_v46 = vld [vmem:[#allocation7 + $0x304] ss:$16 sps:$4 sm:$0xff]  }
 0x13b   :  { %v2570_v48 = vpop.f32.mrf.mxu0  ;;  %v2815_v44 = vld [vmem:[#allocation7 + $0x320] ss:$16 sps:$4 sm:$0xff]  }
 0x13c   :  { %v629_v49 = vadd.f32 %v628_v45, %v622_v47  ;;  %v2820_v45 = vld [vmem:[#allocation7 + $0x104] ss:$16 sps:$4 sm:$0xff]   ;;  %v2818_v47 = vld [vmem:[#allocation7 + $0x100] ss:$16 sps:$4 sm:$0xff]  }
 0x13d   :  { %v2821_v48 = vld [vmem:[#allocation7 + $0x300] ss:$16 sps:$4 sm:$0xff]  }
 0x13e   :  { %v630_v52 = vpack.c.bf16 %v629_v49, %v629_v49  ;;  %v2826_v49 = vld [vmem:[#allocation7 + $0xec] ss:$16 sps:$4 sm:$0xff]  }
 0x140   :  { %878 = vmatmul.mubr.bf16.vlgmr.msra.gmra.mxu1 %v630_v52  ;;  %919 = vmatmul.mubr.bf16.vlgmr.msra.gmra.mxu0 %v630_v52 }
 0x141   :  { %1726 = vmatpush1.bf16.msra.mxu1 %v2728_v50  ;;  %1767 = vmatpush1.bf16.msra.mxu0 %v2731_v51  ;;  %v2829_v50 = vld [vmem:[#allocation7 + $0x2ec] ss:$16 sps:$4 sm:$0xff]   ;;  %v665_v51 = vlaneseq }
 0x142   :  { %1727 = vmatprep.subr.bf16.mxu1 %v2736_v53  ;;  %1768 = vmatprep.subr.bf16.mxu0 %v2739_v54 }
 0x143   :  { %v3158_v52 = vshrl.u32 %v665_v51, 7  ;;  %v2875_v51 = vld [vmem:[#allocation7 + $0x3e8] ss:$16 sps:$4 sm:$0xff]  }
 0x145   :  { %1728 = vmatpush1.bf16.msra.mxu1 %v2734_v55  ;;  %1769 = vmatpush1.bf16.msra.mxu0 %v2737_v56  ;;  %v667_v53 = vsub.s32 0, %v3158_v52  ;;  %v675_v54 = vsub.s32 2, %v3158_v52  ;;  %v663_v55 = vld [vmem:[%s3205_s5] sm:$0xf]  ;;  %v671_v56 = vsub.s32 1, %v3158_v52 }
 0x146   :  { %1729 = vmatprep.subr.bf16.mxu1 %v2742_v57  ;;  %1770 = vmatprep.subr.bf16.mxu0 %v2745_v58  ;;  %v679_v57 = vsub.s32 3, %v3158_v52 }
 0x147   :  { %v668_v58 = vrot.slane %v663_v55, %v667_v53 }
 0x149   :  { %1730 = vmatpush1.bf16.msra.mxu1 %v2740_v59  ;;  %1771 = vmatpush1.bf16.msra.mxu0 %v2743_v60  ;;  %v676_v59 = vrot.slane %v663_v55, %v675_v54  ;;  %v672_v60 = vrot.slane %v663_v55, %v671_v56 }
 0x14a   :  { %1731 = vmatprep.subr.bf16.mxu1 %v2748_v61  ;;  %1772 = vmatprep.subr.bf16.mxu0 %v2751_v62  ;;  %v680_v61 = vrot.slane %v663_v55, %v679_v57  ;;  %v2880_v55 = vld [vmem:[#allocation7 + $0x1cc] ss:$16 sps:$4 sm:$0xff]  }
 0x14d   :  { %1732 = vmatpush1.bf16.msra.mxu1 %v2746_v63  ;;  %1773 = vmatpush1.bf16.msra.mxu0 %v2749_v0 }
 0x14e   :  { %1733 = vmatprep.subr.bf16.mxu1 %v2754_v1  ;;  %1774 = vmatprep.subr.bf16.mxu0 %v2757_v2 }
 0x151   :  { %1734 = vmatpush1.bf16.msra.mxu1 %v2752_v3  ;;  %1775 = vmatpush1.bf16.msra.mxu0 %v2755_v4 }
 0x152   :  { %1735 = vmatprep.subr.bf16.mxu1 %v2760_v5  ;;  %1776 = vmatprep.subr.bf16.mxu0 %v2763_v6 }
 0x155   :  { %1736 = vmatpush1.bf16.msra.mxu1 %v2758_v7  ;;  %1777 = vmatpush1.bf16.msra.mxu0 %v2761_v8 }
 0x156   :  { %1737 = vmatprep.subr.bf16.mxu1 %v2766_v9  ;;  %1778 = vmatprep.subr.bf16.mxu0 %v2769_v10 }
 0x159   :  { %1738 = vmatpush1.bf16.msra.mxu1 %v2764_v11  ;;  %1779 = vmatpush1.bf16.msra.mxu0 %v2767_v12 }
 0x15a   :  { %1739 = vmatprep.subr.bf16.mxu1 %v2772_v13  ;;  %1780 = vmatprep.subr.bf16.mxu0 %v2775_v14 }
 0x15d   :  { %1740 = vmatpush1.bf16.msra.mxu1 %v2770_v15  ;;  %1781 = vmatpush1.bf16.msra.mxu0 %v2773_v16  ;;  %v2824_v16 = vld [vmem:[#allocation7 + $0xe8] ss:$16 sps:$4 sm:$0xff]  }
 0x15e   :  { %1741 = vmatprep.subr.bf16.mxu1 %v2778_v17  ;;  %1782 = vmatprep.subr.bf16.mxu0 %v2781_v18  ;;  %v2827_v17 = vld [vmem:[#allocation7 + $0x2e8] ss:$16 sps:$4 sm:$0xff]  }
 0x161   :  { %1742 = vmatpush2.bf16.msra.mxu1 %v2776_v19  ;;  %1783 = vmatpush2.bf16.msra.mxu0 %v2779_v20  ;;  %v2832_v20 = vld [vmem:[#allocation7 + $0xcc] ss:$16 sps:$4 sm:$0xff]  }
 0x162   :  { %1743 = vmatprep.subr.bf16.mxu1 %v2784_v21  ;;  %1784 = vmatprep.subr.bf16.mxu0 %v2787_v22  ;;  %v2835_v21 = vld [vmem:[#allocation7 + $0x2cc] ss:$16 sps:$4 sm:$0xff]   ;;  %v2830_v22 = vld [vmem:[#allocation7 + $0xc8] ss:$16 sps:$4 sm:$0xff]  }
 0x165   :  { %1744 = vmatpush2.bf16.msra.mxu1 %v2782_v23  ;;  %1785 = vmatpush2.bf16.msra.mxu0 %v2785_v24  ;;  %v2833_v23 = vld [vmem:[#allocation7 + $0x2c8] ss:$16 sps:$4 sm:$0xff]   ;;  %v2838_v24 = vld [vmem:[#allocation7 + $0xac] ss:$16 sps:$4 sm:$0xff]  }
 0x166   :  { %1745 = vmatprep.subr.bf16.mxu1 %v2790_v25  ;;  %1786 = vmatprep.subr.bf16.mxu0 %v2793_v26  ;;  %v2841_v25 = vld [vmem:[#allocation7 + $0x2ac] ss:$16 sps:$4 sm:$0xff]   ;;  %v2836_v26 = vld [vmem:[#allocation7 + $0xa8] ss:$16 sps:$4 sm:$0xff]  }
 0x169   :  { %1746 = vmatpush2.bf16.msra.mxu1 %v2788_v27  ;;  %1787 = vmatpush2.bf16.msra.mxu0 %v2791_v28  ;;  %v2839_v27 = vld [vmem:[#allocation7 + $0x2a8] ss:$16 sps:$4 sm:$0xff]   ;;  %v2844_v28 = vld [vmem:[#allocation7 + $0x8c] ss:$16 sps:$4 sm:$0xff]  }
 0x16a   :  { %1747 = vmatprep.subr.bf16.mxu1 %v2796_v29  ;;  %1788 = vmatprep.subr.bf16.mxu0 %v2799_v30  ;;  %v2847_v29 = vld [vmem:[#allocation7 + $0x28c] ss:$16 sps:$4 sm:$0xff]   ;;  %v2842_v30 = vld [vmem:[#allocation7 + $0x88] ss:$16 sps:$4 sm:$0xff]  }
 0x16d   :  { %1748 = vmatpush2.bf16.msra.mxu1 %v2794_v31  ;;  %1789 = vmatpush2.bf16.msra.mxu0 %v2797_v32  ;;  %v2845_v31 = vld [vmem:[#allocation7 + $0x288] ss:$16 sps:$4 sm:$0xff]   ;;  %v2850_v32 = vld [vmem:[#allocation7 + $0x6c] ss:$16 sps:$4 sm:$0xff]  }
 0x16e   :  { %1749 = vmatprep.subr.bf16.mxu1 %v2802_v33  ;;  %1790 = vmatprep.subr.bf16.mxu0 %v2805_v34  ;;  %v2853_v33 = vld [vmem:[#allocation7 + $0x26c] ss:$16 sps:$4 sm:$0xff]   ;;  %v2848_v34 = vld [vmem:[#allocation7 + $0x68] ss:$16 sps:$4 sm:$0xff]  }
 0x171   :  { %1750 = vmatpush2.bf16.msra.mxu1 %v2800_v35  ;;  %1791 = vmatpush2.bf16.msra.mxu0 %v2803_v36  ;;  %v2851_v35 = vld [vmem:[#allocation7 + $0x268] ss:$16 sps:$4 sm:$0xff]   ;;  %v2856_v36 = vld [vmem:[#allocation7 + $0x4c] ss:$16 sps:$4 sm:$0xff]  }
 0x172   :  { %1751 = vmatprep.subr.bf16.mxu1 %v2808_v37  ;;  %1792 = vmatprep.subr.bf16.mxu0 %v2811_v38  ;;  %v2859_v37 = vld [vmem:[#allocation7 + $0x24c] ss:$16 sps:$4 sm:$0xff]   ;;  %v2854_v38 = vld [vmem:[#allocation7 + $0x48] ss:$16 sps:$4 sm:$0xff]  }
 0x175   :  { %1752 = vmatpush2.bf16.msra.mxu1 %v2806_v39  ;;  %1793 = vmatpush2.bf16.msra.mxu0 %v2809_v40  ;;  %v2857_v39 = vld [vmem:[#allocation7 + $0x248] ss:$16 sps:$4 sm:$0xff]   ;;  %v2862_v40 = vld [vmem:[#allocation7 + $0x2c] ss:$16 sps:$4 sm:$0xff]  }
 0x176   :  { %1753 = vmatprep.subr.bf16.mxu1 %v2814_v41  ;;  %1794 = vmatprep.subr.bf16.mxu0 %v2817_v42  ;;  %v2865_v41 = vld [vmem:[#allocation7 + $0x22c] ss:$16 sps:$4 sm:$0xff]   ;;  %v2860_v42 = vld [vmem:[#allocation7 + $0x28] ss:$16 sps:$4 sm:$0xff]  }
 0x179   :  { %1754 = vmatpush2.bf16.msra.mxu1 %v2812_v43  ;;  %1795 = vmatpush2.bf16.msra.mxu0 %v2815_v44  ;;  %v2863_v43 = vld [vmem:[#allocation7 + $0x228] ss:$16 sps:$4 sm:$0xff]   ;;  %v2868_v44 = vld [vmem:[#allocation7 + $0xc] ss:$16 sps:$4 sm:$0xff]  }
 0x17a   :  { %1755 = vmatprep.subr.bf16.mxu1 %v2820_v45  ;;  %1796 = vmatprep.subr.bf16.mxu0 %v2823_v46  ;;  %v2871_v45 = vld [vmem:[#allocation7 + $0x20c] ss:$16 sps:$4 sm:$0xff]   ;;  %v2866_v46 = vld [vmem:[#allocation7 + $0x8] ss:$16 sps:$4 sm:$0xff]  }
 0x17d   :  { %1756 = vmatpush2.bf16.msra.mxu1 %v2818_v47  ;;  %1797 = vmatpush2.bf16.msra.mxu0 %v2821_v48  ;;  %v2869_v47 = vld [vmem:[#allocation7 + $0x208] ss:$16 sps:$4 sm:$0xff]   ;;  %v2874_v48 = vld [vmem:[#allocation7 + $0x1ec] ss:$16 sps:$4 sm:$0xff]  }
 0x17e   :  { %1807 = vmatprep.subr.bf16.mxu1 %v2826_v49  ;;  %1848 = vmatprep.subr.bf16.mxu0 %v2829_v50  ;;  %v2877_v49 = vld [vmem:[#allocation7 + $0x3ec] ss:$16 sps:$4 sm:$0xff]   ;;  %v2872_v50 = vld [vmem:[#allocation7 + $0x1e8] ss:$16 sps:$4 sm:$0xff]  }
 0x200   :  { %v879_v62 = vpop.f32.mrf.mxu1  ;;  %v920_v63 = vpop.f32.mrf.mxu0 }
 0x201   :  { %v880_v0 = vadd.f32 %v879_v62, %v668_v58  ;;  %v921_v1 = vadd.f32 %v920_v63, %v676_v59  ;;  %v2883_v58 = vld [vmem:[#allocation7 + $0x3cc] ss:$16 sps:$4 sm:$0xff]   ;;  %v2878_v59 = vld [vmem:[#allocation7 + $0x1c8] ss:$16 sps:$4 sm:$0xff]  }
 0x202   :  { %v881_v2 = vpop.f32.mrf.mxu1  ;;  %v922_v3 = vpop.f32.mrf.mxu0  ;;  %v2889_v62 = vld [vmem:[#allocation7 + $0x3ac] ss:$16 sps:$4 sm:$0xff]   ;;  %v2884_v63 = vld [vmem:[#allocation7 + $0x1a8] ss:$16 sps:$4 sm:$0xff]  }
 0x203   :  { %v882_v4 = vadd.f32 %v881_v2, %v672_v60  ;;  %v923_v5 = vadd.f32 %v922_v3, %v680_v61  ;;  %v927_v6 = vmax.f32 %v880_v0, 0.0  ;;  %v929_v7 = vmax.f32 %v921_v1, 0.0  ;;  %v2881_v60 = vld [vmem:[#allocation7 + $0x3c8] ss:$16 sps:$4 sm:$0xff]   ;;  %v2886_v61 = vld [vmem:[#allocation7 + $0x1ac] ss:$16 sps:$4 sm:$0xff]  }
 0x204   :  { %v883_v8 = vpop.f32.mrf.mxu1  ;;  %v924_v9 = vpop.f32.mrf.mxu0  ;;  %v2887_v0 = vld [vmem:[#allocation7 + $0x3a8] ss:$16 sps:$4 sm:$0xff]   ;;  %v2892_v1 = vld [vmem:[#allocation7 + $0x18c] ss:$16 sps:$4 sm:$0xff]  }
 0x205   :  { %v928_v10 = vmax.f32 %v882_v4, 0.0  ;;  %v930_v11 = vmax.f32 %v923_v5, 0.0  ;;  %v3175_v18 = vpack.c.bf16 %v927_v6, %v927_v6  ;;  %v3177_v19 = vpack.c.bf16 %v929_v7, %v929_v7  ;;  %v2895_v2 = vld [vmem:[#allocation7 + $0x38c] ss:$16 sps:$4 sm:$0xff]   ;;  %v2890_v3 = vld [vmem:[#allocation7 + $0x188] ss:$16 sps:$4 sm:$0xff]  }
 0x206   :  { %v884_v12 = vpop.f32.mrf.mxu1  ;;  %v925_v13 = vpop.f32.mrf.mxu0  ;;  %v2893_v4 = vld [vmem:[#allocation7 + $0x388] ss:$16 sps:$4 sm:$0xff]   ;;  %v2898_v5 = vld [vmem:[#allocation7 + $0x16c] ss:$16 sps:$4 sm:$0xff]  }
 0x207   :  { %v932_v14 = vpack.c.bf16 %v928_v10, %v928_v10  ;;  %v934_v15 = vpack.c.bf16 %v930_v11, %v930_v11  ;;  %v2901_v6 = vld [vmem:[#allocation7 + $0x36c] ss:$16 sps:$4 sm:$0xff]   ;;  %v2896_v7 = vld [vmem:[#allocation7 + $0x168] ss:$16 sps:$4 sm:$0xff]  }
 0x208   :  { %v2899_v8 = vld [vmem:[#allocation7 + $0x368] ss:$16 sps:$4 sm:$0xff]   ;;  %v2904_v9 = vld [vmem:[#allocation7 + $0x14c] ss:$16 sps:$4 sm:$0xff]  }
 0x209   :  { %1757 = vmatprep.mubr.bf16.mxu1 %v932_v14  ;;  %1798 = vmatprep.mubr.bf16.mxu0 %v934_v15  ;;  %v2907_v10 = vld [vmem:[#allocation7 + $0x34c] ss:$16 sps:$4 sm:$0xff]   ;;  %v2902_v11 = vld [vmem:[#allocation7 + $0x148] ss:$16 sps:$4 sm:$0xff]  }
 0x20a   :  { %1758 = vmatmul.mubr.bf16.vlgmr.msra.gmra.mxu1 %v3175_v18  ;;  %1799 = vmatmul.mubr.bf16.vlgmr.msra.gmra.mxu0 %v3177_v19  ;;  %v2905_v12 = vld [vmem:[#allocation7 + $0x348] ss:$16 sps:$4 sm:$0xff]   ;;  %v2910_v13 = vld [vmem:[#allocation7 + $0x12c] ss:$16 sps:$4 sm:$0xff]  }
 0x20b   :  { %1808 = vmatpush1.bf16.msra.mxu1 %v2824_v16  ;;  %1849 = vmatpush1.bf16.msra.mxu0 %v2827_v17  ;;  %v2911_v16 = vld [vmem:[#allocation7 + $0x328] ss:$16 sps:$4 sm:$0xff]   ;;  %v2916_v17 = vld [vmem:[#allocation7 + $0x10c] ss:$16 sps:$4 sm:$0xff]  }
 0x20c   :  { %1839 = vmatprep.mubr.bf16.mxu1 %v932_v14  ;;  %1880 = vmatprep.mubr.bf16.mxu0 %v934_v15  ;;  %v2913_v14 = vld [vmem:[#allocation7 + $0x32c] ss:$16 sps:$4 sm:$0xff]   ;;  %v2908_v15 = vld [vmem:[#allocation7 + $0x128] ss:$16 sps:$4 sm:$0xff]  }
 0x20d   :  { %1809 = vmatprep.subr.bf16.mxu1 %v2832_v20  ;;  %1850 = vmatprep.subr.bf16.mxu0 %v2835_v21  ;;  %v2919_v20 = vld [vmem:[#allocation7 + $0x30c] ss:$16 sps:$4 sm:$0xff]   ;;  %v2914_v21 = vld [vmem:[#allocation7 + $0x108] ss:$16 sps:$4 sm:$0xff]  }
 0x20f   :  { %1810 = vmatpush1.bf16.msra.mxu1 %v2830_v22  ;;  %1851 = vmatpush1.bf16.msra.mxu0 %v2833_v23  ;;  %v2917_v22 = vld [vmem:[#allocation7 + $0x308] ss:$16 sps:$4 sm:$0xff]  }
 0x210   :  { %1811 = vmatprep.subr.bf16.mxu1 %v2838_v24  ;;  %1852 = vmatprep.subr.bf16.mxu0 %v2841_v25  ;;  %v2920_v23 = vld [vmem:[#allocation8 + $0x78] sm:$0xff]   ;;  %v2922_v25 = vld [vmem:[#allocation8 + $0x70] sm:$0xff]  }
 0x211   :  { %v2921_v24 = vld [vmem:[#allocation8 + $0x38] sm:$0xff]  }
 0x213   :  { %1812 = vmatpush1.bf16.msra.mxu1 %v2836_v26  ;;  %1853 = vmatpush1.bf16.msra.mxu0 %v2839_v27  ;;  %v2923_v26 = vld [vmem:[#allocation8 + $0x30] sm:$0xff]   ;;  %v2924_v27 = vld [vmem:[#allocation8 + $0x68] sm:$0xff]  }
 0x214   :  { %1813 = vmatprep.subr.bf16.mxu1 %v2844_v28  ;;  %1854 = vmatprep.subr.bf16.mxu0 %v2847_v29  ;;  %v2925_v28 = vld [vmem:[#allocation8 + $0x28] sm:$0xff]   ;;  %v2926_v29 = vld [vmem:[#allocation8 + $0x60] sm:$0xff]  }
 0x217   :  { %1814 = vmatpush1.bf16.msra.mxu1 %v2842_v30  ;;  %1855 = vmatpush1.bf16.msra.mxu0 %v2845_v31  ;;  %v2927_v30 = vld [vmem:[#allocation8 + $0x20] sm:$0xff]   ;;  %v2928_v31 = vld [vmem:[#allocation8 + $0x58] sm:$0xff]  }
 0x218   :  { %1815 = vmatprep.subr.bf16.mxu1 %v2850_v32  ;;  %1856 = vmatprep.subr.bf16.mxu0 %v2853_v33  ;;  %v2936_v32 = vld [vmem:[#allocation8 + $0xf8] sm:$0xff]  }
 0x219   :  { %v2937_v33 = vld [vmem:[#allocation8 + $0xb8] sm:$0xff]  }
 0x21b   :  { %1816 = vmatpush1.bf16.msra.mxu1 %v2848_v34  ;;  %1857 = vmatpush1.bf16.msra.mxu0 %v2851_v35  ;;  %v2938_v34 = vld [vmem:[#allocation8 + $0xf0] sm:$0xff]   ;;  %v2929_v35 = vld [vmem:[#allocation8 + $0x18] sm:$0xff]  }
 0x21c   :  { %1817 = vmatprep.subr.bf16.mxu1 %v2856_v36  ;;  %1858 = vmatprep.subr.bf16.mxu0 %v2859_v37  ;;  %v2940_v36 = vld [vmem:[#allocation8 + $0xe8] sm:$0xff]   ;;  %v2931_v37 = vld [vmem:[#allocation8 + $0x10] sm:$0xff]  }
 0x21f   :  { %1818 = vmatpush1.bf16.msra.mxu1 %v2854_v38  ;;  %1859 = vmatpush1.bf16.msra.mxu0 %v2857_v39  ;;  %v2932_v38 = vld [vmem:[#allocation8 + $0x48] sm:$0xff]  }
 0x220   :  { %1819 = vmatprep.subr.bf16.mxu1 %v2862_v40  ;;  %1860 = vmatprep.subr.bf16.mxu0 %v2865_v41  ;;  %v2941_v39 = vld [vmem:[#allocation8 + $0xa8] sm:$0xff]   ;;  %v2942_v40 = vld [vmem:[#allocation8 + $0xe0] sm:$0xff]  }
 0x221   :  { %v2933_v41 = vld [vmem:[#allocation8 + $0x8] sm:$0xff]  }
 0x223   :  { %1820 = vmatpush1.bf16.msra.mxu1 %v2860_v42  ;;  %1861 = vmatpush1.bf16.msra.mxu0 %v2863_v43  ;;  %v2934_v42 = vld [vmem:[#allocation8 + $0x40] sm:$0xff]  }
 0x224   :  { %1821 = vmatprep.subr.bf16.mxu1 %v2868_v44  ;;  %1862 = vmatprep.subr.bf16.mxu0 %v2871_v45  ;;  %v2943_v43 = vld [vmem:[#allocation8 + $0xa0] sm:$0xff]   ;;  %v2944_v44 = vld [vmem:[#allocation8 + $0xd8] sm:$0xff]  }
 0x225   :  { %v2935_v45 = vld [vmem:[#allocation8] sm:$0xff]  }
 0x227   :  { %1822 = vmatpush1.bf16.msra.mxu1 %v2866_v46  ;;  %1863 = vmatpush1.bf16.msra.mxu0 %v2869_v47  ;;  %v2945_v46 = vld [vmem:[#allocation8 + $0x98] sm:$0xff]   ;;  %v2946_v47 = vld [vmem:[#allocation8 + $0xd0] sm:$0xff]  }
 0x228   :  { %1823 = vmatprep.subr.bf16.mxu1 %v2874_v48  ;;  %1864 = vmatprep.subr.bf16.mxu0 %v2877_v49  ;;  %v2947_v48 = vld [vmem:[#allocation8 + $0x90] sm:$0xff]   ;;  %v2948_v49 = vld [vmem:[#allocation8 + $0xc8] sm:$0xff]  }
 0x22b   :  { %1824 = vmatpush2.bf16.msra.mxu1 %v2872_v50  ;;  %1865 = vmatpush2.bf16.msra.mxu0 %v2875_v51  ;;  %v2949_v50 = vld [vmem:[#allocation8 + $0x88] sm:$0xff]   ;;  %v2950_v51 = vld [vmem:[#allocation8 + $0xc0] sm:$0xff]  }
 0x22c   :  { %1825 = vmatprep.subr.bf16.mxu1 %v2880_v55  ;;  %1866 = vmatprep.subr.bf16.mxu0 %v2883_v58  ;;  %v2951_v55 = vld [vmem:[#allocation8 + $0x80] sm:$0xff]  }
 0x22d   :  { %v1063_v58 = vld [vmem:[%s3207_s7] sm:$0xf] }
 0x22f   :  { %1826 = vmatpush2.bf16.msra.mxu1 %v2878_v59  ;;  %1867 = vmatpush2.bf16.msra.mxu0 %v2881_v60  ;;  %v1068_v59 = vrot.slane %v1063_v58, %v667_v53  ;;  %v1072_v60 = vrot.slane %v1063_v58, %v671_v56  ;;  %v1076_v53 = vrot.slane %v1063_v58, %v675_v54 }
 0x230   :  { %1827 = vmatprep.subr.bf16.mxu1 %v2886_v61  ;;  %1868 = vmatprep.subr.bf16.mxu0 %v2889_v62  ;;  %v1080_v56 = vrot.slane %v1063_v58, %v679_v57 }
 0x233   :  { %1828 = vmatpush2.bf16.msra.mxu1 %v2884_v63  ;;  %1869 = vmatpush2.bf16.msra.mxu0 %v2887_v0 }
 0x234   :  { %1829 = vmatprep.subr.bf16.mxu1 %v2892_v1  ;;  %1870 = vmatprep.subr.bf16.mxu0 %v2895_v2 }
 0x237   :  { %1830 = vmatpush2.bf16.msra.mxu1 %v2890_v3  ;;  %1871 = vmatpush2.bf16.msra.mxu0 %v2893_v4 }
 0x238   :  { %1831 = vmatprep.subr.bf16.mxu1 %v2898_v5  ;;  %1872 = vmatprep.subr.bf16.mxu0 %v2901_v6 }
 0x23b   :  { %1832 = vmatpush2.bf16.msra.mxu1 %v2896_v7  ;;  %1873 = vmatpush2.bf16.msra.mxu0 %v2899_v8 }
 0x23c   :  { %1833 = vmatprep.subr.bf16.mxu1 %v2904_v9  ;;  %1874 = vmatprep.subr.bf16.mxu0 %v2907_v10 }
 0x23f   :  { %1834 = vmatpush2.bf16.msra.mxu1 %v2902_v11  ;;  %1875 = vmatpush2.bf16.msra.mxu0 %v2905_v12 }
 0x240   :  { %1835 = vmatprep.subr.bf16.mxu1 %v2910_v13  ;;  %1876 = vmatprep.subr.bf16.mxu0 %v2913_v14 }
 0x243   :  { %1836 = vmatpush2.bf16.msra.mxu1 %v2908_v15  ;;  %1877 = vmatpush2.bf16.msra.mxu0 %v2911_v16 }
 0x244   :  { %1837 = vmatprep.subr.bf16.mxu1 %v2916_v17  ;;  %1878 = vmatprep.subr.bf16.mxu0 %v2919_v20 }
 0x247   :  { %1838 = vmatpush2.bf16.msra.mxu1 %v2914_v21  ;;  %1879 = vmatpush2.bf16.msra.mxu0 %v2917_v22 }
 0x248   :  { %2572 = vmatprep.subr.bf16.mxu1 %v2920_v23  ;;  %2594 = vmatprep.subr.bf16.mxu0 %v2936_v32 }
 0x24a   :  { %1840 = vmatmul.mubr.bf16.vlgmr.msra.gmra.mxu1 %v3175_v18  ;;  %1881 = vmatmul.mubr.bf16.vlgmr.msra.gmra.mxu0 %v3177_v19  ;;  %v2930_v18 = vld [vmem:[#allocation8 + $0x50] sm:$0xff]  }
 0x24b   :  { %2573 = vmatpush3.bf16.msra.mxu1 %v2921_v24  ;;  %2595 = vmatpush3.bf16.msra.mxu0 %v2937_v33  ;;  %v2939_v19 = vld [vmem:[#allocation8 + $0xb0] sm:$0xff]   ;;  %v2473_v33 = vld [vmem:[%s3209_s9] ss:$0 sm:$0xff] }
 0x24c   :  { %2574 = vmatprep.subr.bf16.mxu1 %v2922_v25  ;;  %2596 = vmatprep.subr.bf16.mxu0 %v2938_v34 }
 0x24f   :  { %2575 = vmatpush3.bf16.msra.mxu1 %v2923_v26  ;;  %2597 = vmatpush3.bf16.msra.mxu0 %v2939_v19 }
 0x250   :  { %2576 = vmatprep.subr.bf16.mxu1 %v2924_v27  ;;  %2598 = vmatprep.subr.bf16.mxu0 %v2940_v36 }
 0x253   :  { %2577 = vmatpush3.bf16.msra.mxu1 %v2925_v28  ;;  %2599 = vmatpush3.bf16.msra.mxu0 %v2941_v39 }
 0x254   :  { %2578 = vmatprep.subr.bf16.mxu1 %v2926_v29  ;;  %2600 = vmatprep.subr.bf16.mxu0 %v2942_v40 }
 0x257   :  { %2579 = vmatpush3.bf16.msra.mxu1 %v2927_v30  ;;  %2601 = vmatpush3.bf16.msra.mxu0 %v2943_v43 }
 0x258   :  { %2580 = vmatprep.subr.bf16.mxu1 %v2928_v31  ;;  %2602 = vmatprep.subr.bf16.mxu0 %v2944_v44 }
 0x25b   :  { %2581 = vmatpush3.bf16.msra.mxu1 %v2929_v35  ;;  %2603 = vmatpush3.bf16.msra.mxu0 %v2945_v46 }
 0x25c   :  { %2582 = vmatprep.subr.bf16.mxu1 %v2930_v18  ;;  %2604 = vmatprep.subr.bf16.mxu0 %v2946_v47 }
 0x25f   :  { %2583 = vmatpush3.bf16.msra.mxu1 %v2931_v37  ;;  %2605 = vmatpush3.bf16.msra.mxu0 %v2947_v48 }
 0x260   :  { %2584 = vmatprep.subr.bf16.mxu1 %v2932_v38  ;;  %2606 = vmatprep.subr.bf16.mxu0 %v2948_v49 }
 0x263   :  { %2585 = vmatpush3.bf16.msra.mxu1 %v2933_v41  ;;  %2607 = vmatpush3.bf16.msra.mxu0 %v2949_v50 }
 0x264   :  { %2586 = vmatprep.subr.bf16.mxu1 %v2934_v42  ;;  %2608 = vmatprep.subr.bf16.mxu0 %v2950_v51 }
 0x267   :  { %2587 = vmatpush3.bf16.msra.mxu1 %v2935_v45  ;;  %2609 = vmatpush3.bf16.msra.mxu0 %v2951_v55 }
 0x2ca   :  { %v1759_v61 = vpop.f32.mrf.mxu1  ;;  %v1800_v62 = vpop.f32.mrf.mxu0 }
 0x2cb   :  { %v1760_v63 = vadd.f32 %v1759_v61, %v1068_v59 }
 0x2cc   :  { %v1761_v0 = vpop.f32.mrf.mxu1  ;;  %v1802_v1 = vpop.f32.mrf.mxu0 }
 0x2cd   :  { %v1801_v2 = vadd.f32 %v1800_v62, %v1760_v63  ;;  %v1762_v3 = vadd.f32 %v1761_v0, %v1072_v60 }
 0x2ce   :  { %v1763_v4 = vpop.f32.mrf.mxu1  ;;  %v1804_v5 = vpop.f32.mrf.mxu0 }
 0x2cf   :  { %v1803_v6 = vadd.f32 %v1802_v1, %v1762_v3  ;;  %v1889_v7 = vmax.f32 %v1801_v2, 0.0 }
 0x2d0   :  { %v1764_v8 = vpop.f32.mrf.mxu1  ;;  %v1805_v9 = vpop.f32.mrf.mxu0 }
 0x2d1   :  { %v1890_v10 = vmax.f32 %v1803_v6, 0.0  ;;  %v1893_v12 = vpack.c.bf16 %v1889_v7, %v1889_v7 }
 0x2d3   :  { %v1894_v11 = vpack.c.bf16 %v1890_v10, %v1890_v10 }
 0x2d5   :  { %2192 = vmatprep.mubr.bf16.mxu1 %v1894_v11 }
 0x2d6   :  { %2193 = vmatmul.mubr.bf16.vlgmr.msra.gmra.mxu1 %v1893_v12 }
 0x30a   :  { %v1841_v13 = vpop.f32.mrf.mxu1  ;;  %v1882_v14 = vpop.f32.mrf.mxu0 }
 0x30b   :  { %v1842_v15 = vadd.f32 %v1841_v13, %v1076_v53 }
 0x30c   :  { %v1843_v16 = vpop.f32.mrf.mxu1  ;;  %v1884_v17 = vpop.f32.mrf.mxu0 }
 0x30d   :  { %v1883_v20 = vadd.f32 %v1882_v14, %v1842_v15  ;;  %v1844_v21 = vadd.f32 %v1843_v16, %v1080_v56 }
 0x30e   :  { %v1845_v22 = vpop.f32.mrf.mxu1  ;;  %v1886_v23 = vpop.f32.mrf.mxu0 }
 0x30f   :  { %v1885_v24 = vadd.f32 %v1884_v17, %v1844_v21  ;;  %v1891_v25 = vmax.f32 %v1883_v20, 0.0 }
 0x310   :  { %v1846_v26 = vpop.f32.mrf.mxu1  ;;  %v1887_v27 = vpop.f32.mrf.mxu0 }
 0x311   :  { %v1892_v28 = vmax.f32 %v1885_v24, 0.0  ;;  %v1895_v30 = vpack.c.bf16 %v1891_v25, %v1891_v25 }
 0x313   :  { %v1896_v29 = vpack.c.bf16 %v1892_v28, %v1892_v28 }
 0x315   :  { %2232 = vmatprep.mubr.bf16.mxu0 %v1896_v29 }
 0x316   :  { %2233 = vmatmul.mubr.bf16.vlgmr.msra.gmra.mxu0 %v1895_v30 }
 0x396   :  { %v2588_v52 = vpop.f32.mrf.mxu1 }
 0x398   :  { %v2589_v54 = vpop.f32.mrf.mxu1 }
 0x399   :  { %v2590_v32 = vadd.f32 %v2589_v54, %v2588_v52 }
 0x39a   :  { %v2591_v57 = vpop.f32.mrf.mxu1 }
 0x39b   :  { %v2195_v18 = vadd.f32 %v2590_v32, %v2473_v33 }
 0x39c   :  { %v2592_v31 = vpop.f32.mrf.mxu1 }
 0x3d6   :  { %v2610_v34 = vpop.f32.mrf.mxu0 }
 0x3d8   :  { %v2611_v35 = vpop.f32.mrf.mxu0 }
 0x3d9   :  { %v2612_v19 = vadd.f32 %v2611_v35, %v2610_v34 }
 0x3da   :  { %v2613_v36 = vpop.f32.mrf.mxu0 }
 0x3db   :  { %v2235_v37 = vadd.f32 %v2612_v19, %v2195_v18 }
 0x3dc   :  { %v2614_v38 = vpop.f32.mrf.mxu0 }
 0x3dd   :  { %2240 = vst [vmem:[#allocation10] sm:$0xff] %v2235_v37 }
 0x3de   :  { %3043 = shalt.err (!%p3040_p10)
}
 0x3df   :  { %2250 = dma.vmem_to_hbm [thread:$0]  %s2248_s25, 128, %s3210_s10, [#allocation4]  }
 0x3e0   :  { %3058 = dma.done.wait [#allocation4], 128  }
 0x3e1   :  { %3059 = vsyncadd [#allocation4], 4294967168 }
 0x3e2   :  { %2254 = vsyncpa [#allocation3], 1 }
 0x3e3   :  { %2255 = vsyncpa [#allocation6], 1 }
 0x3e4   :  { %2256 = vsyncpa [#allocation9], 1 }
 0x3e5   :  { %2257 = vsyncpa [#allocation4], 1 }

// kernel: latent_unet_forward.1
= control target key start
LH: loop header
LB: loop body
LE: loop exit
PB: predicated region body
PF: predicated region fallthrough
CT: control target
= control target key end

     0   :  { %15 = vsyncpa [#allocation3], 0  ;;  %s3200_s0 = inlined_call_operand.vmem [shape: bf16[8,128], index: 0, kind: input, shape index: {}]   ;;  %s3201_s1 = inlined_call_operand.vmem [shape: bf16[8,768], index: 1, kind: input, shape index: {}]   ;;  %s3202_s2 = inlined_call_operand.hbm [shape: bf16[768,128], index: 2, kind: input, shape index: {}]   ;;  %s3203_s3 = inlined_call_operand.vmem [shape: f32[1,128], index: 3, kind: input, shape index: {}]   ;;  %s3204_s4 = inlined_call_operand.hbm [shape: bf16[128,512], index: 4, kind: input, shape index: {}]   ;;  %s3205_s5 = inlined_call_operand.vmem [shape: f32[1,512], index: 5, kind: input, shape index: {}]   ;;  %s3206_s6 = inlined_call_operand.hbm [shape: bf16[512,512], index: 6, kind: input, shape index: {}]   ;;  %s3207_s7 = inlined_call_operand.vmem [shape: f32[1,512], index: 7, kind: input, shape index: {}]   ;;  %s3208_s8 = inlined_call_operand.hbm [shape: bf16[512,128], index: 8, kind: input, shape index: {}]   ;;  %s3209_s9 = inlined_call_operand.vmem [shape: f32[1,128], index: 9, kind: input, shape index: {}]   ;;  %s3210_s10 = inlined_call_operand.hbm [shape: f32[8,128], index: 10, kind: output, shape index: {}]  }
   0x1   :  { %16 = vsyncpa [#allocation6], 0 }
   0x2   :  { %17 = vsyncpa [#allocation9], 0 }
   0x3   :  { %18 = vsyncpa [#allocation4], 0  ;;  %s3060_s13 = smov [#allocation5]  }
   0x4   :  { %s42_s14 = sshll.u32 %s3060_s13, 4  ;;  %s43_s14 = int_to_ptr.vmem [resolvable:$true] %s42_s14 }
   0x5   :  { %s2960_s15 = scalar_lea.vmem %s43_s14, 4096  ;;  %p2965_p1 = scmp.lt.s32.totalorder %s43_s14, %s43_s14 }
   0x6   :  { %p2961_p0 = scmp.ne.s32.totalorder %s43_s14, %s2960_s15  ;;  %p2966_p2 = scmp.lt.s32.totalorder %s2960_s15, %s2960_s15 }
   0x8   :  { %p2967_p3 = por %p2966_p2, %p2965_p1 }
   0xa   :  { %p2968_p4 = pnand %p2967_p3, %p2961_p0 }
   0xc   :  { %2971 = shalt.err (!%p2968_p4)
}
   0xd   :  { %s3061_s16 = smov 256   ;;  %s3062_s17 = smov 16  }
   0xe   :  { %48 = dma.hbm_to_vmem [thread:$0]  %s3204_s4, 4096, %s43_s14, [#allocation6], %s3061_s16, %s3061_s16, %s3062_s17  }
   0xf   :  { %s3063_s20 = smov [#allocation2]  }
  0x10   :  { %s28_s21 = sshll.u32 %s3063_s20, 4  ;;  %s29_s21 = int_to_ptr.vmem [resolvable:$true] %s28_s21 }
  0x11   :  { %s2980_s22 = scalar_lea.vmem %s29_s21, 6144  ;;  %p2985_p6 = scmp.lt.s32.totalorder %s29_s21, %s29_s21 }
  0x12   :  { %p2981_p5 = scmp.ne.s32.totalorder %s29_s21, %s2980_s22  ;;  %p2986_p7 = scmp.lt.s32.totalorder %s2980_s22, %s2980_s22 }
  0x14   :  { %p2987_p8 = por %p2986_p7, %p2985_p6 }
  0x16   :  { %p2988_p9 = pnand %p2987_p8, %p2981_p5 }
  0x18   :  { %2991 = shalt.err (!%p2988_p9)
}
  0x19   :  { %s3064_s23 = smov 64   ;;  %s3065_s24 = smov 4  }
  0x1a   :  { %34 = dma.hbm_to_vmem [thread:$0]  %s3202_s2, 6144, %s29_s21, [#allocation3], %s3064_s23, %s3064_s23, %s3065_s24  }
  0x1b   :  { %s3066_s27 = smov [#allocation7]   ;;  %s3067_s29 = smov [#allocation8]  }
  0x1c   :  { %s56_s28 = sshll.u32 %s3066_s27, 4  ;;  %s70_s4 = sshll.u32 %s3067_s29, 4  ;;  %s57_s28 = int_to_ptr.vmem [resolvable:$true] %s56_s28  ;;  %s71_s4 = int_to_ptr.vmem [resolvable:$true] %s70_s4 }
  0x1d   :  { %s3000_s30 = scalar_lea.vmem %s57_s28, 16384  ;;  %p3005_p11 = scmp.lt.s32.totalorder %s57_s28, %s57_s28 }
  0x1e   :  { %p3001_p10 = scmp.ne.s32.totalorder %s57_s28, %s3000_s30  ;;  %p3006_p12 = scmp.lt.s32.totalorder %s3000_s30, %s3000_s30 }
  0x20   :  { %p3007_p13 = por %p3006_p12, %p3005_p11 }
  0x22   :  { %p3008_p0 = pnand %p3007_p13, %p3001_p10 }
  0x24   :  { %3011 = shalt.err (!%p3008_p0)
}
  0x25   :  { %62 = dma.hbm_to_vmem [thread:$0]  %s3206_s6, 16384, %s57_s28, [#allocation6], %s3061_s16, %s3061_s16, %s3062_s17  }
  0x26   :  { %s3020_s2 = scalar_lea.vmem %s71_s4, 4096  ;;  %p3025_p2 = scmp.lt.s32.totalorder %s71_s4, %s71_s4 }
  0x27   :  { %p3021_p1 = scmp.ne.s32.totalorder %s71_s4, %s3020_s2  ;;  %p3026_p3 = scmp.lt.s32.totalorder %s3020_s2, %s3020_s2 }
  0x29   :  { %p3027_p4 = por %p3026_p3, %p3025_p2 }
  0x2b   :  { %p3028_p5 = pnand %p3027_p4, %p3021_p1 }
  0x2d   :  { %3031 = shalt.err (!%p3028_p5)
}
  0x2e   :  { %76 = dma.hbm_to_vmem [thread:$0]  %s3208_s8, 4096, %s71_s4, [#allocation9], %s3064_s23, %s3064_s23, %s3065_s24  }
  0x2f   :  { %3052 = dma.done.wait [#allocation3], 6144  }
  0x30   :  { %3053 = vsyncadd [#allocation3], 4294961152 }
  0x31   :  { %3054 = dma.done.wait [#allocation6], 20480  }
  0x32   :  { %3055 = vsyncadd [#allocation6], 4294946816 }
  0x33   :  { %3056 = dma.done.wait [#allocation9], 4096  }
  0x34   :  { %3057 = vsyncadd [#allocation9], 4294963200  ;;  %v2626_v0 = vld [vmem:[#allocation2 + $0x78] sm:$0xff]   ;;  %v2630_v4 = vld [vmem:[#allocation2 + $0x70] sm:$0xff]   ;;  %s3069_s24 = smov [#allocation10]  }
  0x35   :  { %v2627_v1 = vld [vmem:[#allocation2 + $0x38] sm:$0xff]   ;;  %2506 = vmatprep.subr.bf16.mxu0 %v2626_v0  ;;  %v2631_v5 = vld [vmem:[#allocation2 + $0x30] sm:$0xff]   ;;  %v2634_v8 = vld [vmem:[#allocation2 + $0x68] sm:$0xff]   ;;  %s2247_s25 = sshll.u32 %s3069_s24, 4  ;;  %s2248_s25 = int_to_ptr.vmem [resolvable:$true] %s2247_s25 }
  0x36   :  { %v2628_v2 = vld [vmem:[#allocation2 + $0xf8] sm:$0xff]   ;;  %2507 = vmatpush3.bf16.msra.mxu0 %v2627_v1  ;;  %v2632_v6 = vld [vmem:[#allocation2 + $0xf0] sm:$0xff]   ;;  %v2635_v9 = vld [vmem:[#allocation2 + $0x28] sm:$0xff]   ;;  %s3032_s26 = scalar_lea.vmem %s2248_s25, 128  ;;  %p3037_p7 = scmp.lt.s32.totalorder %s2248_s25, %s2248_s25 }
  0x37   :  { %v2629_v3 = vld [vmem:[#allocation2 + $0xb8] sm:$0xff]   ;;  %2528 = vmatprep.subr.bf16.mxu1 %v2628_v2  ;;  %2508 = vmatprep.subr.bf16.mxu0 %v2630_v4  ;;  %v2633_v7 = vld [vmem:[#allocation2 + $0xb0] sm:$0xff]   ;;  %v2636_v10 = vld [vmem:[#allocation2 + $0xe8] sm:$0xff]   ;;  %p3033_p6 = scmp.ne.s32.totalorder %s2248_s25, %s3032_s26  ;;  %p3038_p8 = scmp.lt.s32.totalorder %s3032_s26, %s3032_s26 }
  0x38   :  { %2529 = vmatpush3.bf16.msra.mxu1 %v2629_v3  ;;  %v2637_v11 = vld [vmem:[#allocation2 + $0xa8] sm:$0xff]   ;;  %v2638_v12 = vld [vmem:[#allocation2 + $0x60] sm:$0xff]   ;;  %v2642_v16 = vld [vmem:[#allocation2 + $0x58] sm:$0xff]  }
  0x39   :  { %2530 = vmatprep.subr.bf16.mxu1 %v2632_v6  ;;  %v2639_v13 = vld [vmem:[#allocation2 + $0x20] sm:$0xff]   ;;  %v2643_v17 = vld [vmem:[#allocation2 + $0x18] sm:$0xff]   ;;  %v2646_v20 = vld [vmem:[#allocation2 + $0x50] sm:$0xff]   ;;  %p3039_p9 = por %p3038_p8, %p3037_p7 }
  0x3a   :  { %2509 = vmatpush3.bf16.msra.mxu0 %v2631_v5  ;;  %v2640_v14 = vld [vmem:[#allocation2 + $0xe0] sm:$0xff]   ;;  %v2644_v18 = vld [vmem:[#allocation2 + $0xd8] sm:$0xff]   ;;  %v2647_v21 = vld [vmem:[#allocation2 + $0x10] sm:$0xff]  }
  0x3b   :  { %2510 = vmatprep.subr.bf16.mxu0 %v2634_v8  ;;  %v2641_v15 = vld [vmem:[#allocation2 + $0xa0] sm:$0xff]   ;;  %v2645_v19 = vld [vmem:[#allocation2 + $0x98] sm:$0xff]   ;;  %v2648_v22 = vld [vmem:[#allocation2 + $0xd0] sm:$0xff]   ;;  %p3040_p10 = pnand %p3039_p9, %p3033_p6 }
  0x3c   :  { %2531 = vmatpush3.bf16.msra.mxu1 %v2633_v7  ;;  %v2649_v23 = vld [vmem:[#allocation2 + $0x90] sm:$0xff]   ;;  %v2650_v24 = vld [vmem:[#allocation2 + $0x48] sm:$0xff]   ;;  %v2654_v28 = vld [vmem:[#allocation2 + $0x40] sm:$0xff]  }
  0x3d   :  { %2532 = vmatprep.subr.bf16.mxu1 %v2636_v10  ;;  %v2651_v25 = vld [vmem:[#allocation2 + $0x8] sm:$0xff]   ;;  %v2655_v29 = vld [vmem:[#allocation2] sm:$0xff]   ;;  %v2660_v35 = vld [vmem:[#allocation2 + $0x178] sm:$0xff]  }
  0x3e   :  { %2511 = vmatpush3.bf16.msra.mxu0 %v2635_v9  ;;  %v2652_v26 = vld [vmem:[#allocation2 + $0xc8] sm:$0xff]   ;;  %v2656_v30 = vld [vmem:[#allocation2 + $0xc0] sm:$0xff]   ;;  %v2663_v39 = vld [vmem:[#allocation2 + $0x138] sm:$0xff]  }
  0x3f   :  { %2512 = vmatprep.subr.bf16.mxu0 %v2638_v12  ;;  %v2653_v27 = vld [vmem:[#allocation2 + $0x88] sm:$0xff]   ;;  %v92_v31 = vld [vmem:[%s3201_s1] sm:$0xff]  ;;  %v2664_v40 = vld [vmem:[#allocation2 + $0x170] sm:$0xff]  }
  0x40   :  { %2533 = vmatpush3.bf16.msra.mxu1 %v2637_v11  ;;  %v2259_v32 = vcombine.low %v92_v31, %v92_v31  ;;  %v2260_v33 = vcombine.high %v92_v31, %v92_v31  ;;  %v2659_v34 = vld [vmem:[#allocation2 + $0x80] sm:$0xff]   ;;  %v93_v36 = vld [vmem:[%s3201_s1 + $0x8] sm:$0xff]  ;;  %v2665_v41 = vld [vmem:[#allocation2 + $0x130] sm:$0xff]  }
  0x41   :  { %2534 = vmatprep.subr.bf16.mxu1 %v2640_v14  ;;  %v2261_v37 = vcombine.low %v93_v36, %v93_v36  ;;  %v2262_v38 = vcombine.high %v93_v36, %v93_v36  ;;  %v2666_v42 = vld [vmem:[#allocation2 + $0x168] sm:$0xff]   ;;  %v2668_v44 = vld [vmem:[#allocation2 + $0x160] sm:$0xff]   ;;  %v2670_v46 = vld [vmem:[#allocation2 + $0x158] sm:$0xff]  }
  0x42   :  { %2513 = vmatpush3.bf16.msra.mxu0 %v2639_v13  ;;  %539 = vmatprep.mubr.bf16.mxu0 %v2260_v33  ;;  %v2667_v43 = vld [vmem:[#allocation2 + $0x128] sm:$0xff]   ;;  %v2669_v45 = vld [vmem:[#allocation2 + $0x120] sm:$0xff]   ;;  %v2671_v47 = vld [vmem:[#allocation2 + $0x118] sm:$0xff]  }
  0x43   :  { %2514 = vmatprep.subr.bf16.mxu0 %v2642_v16  ;;  %579 = vmatprep.mubr.bf16.mxu1 %v2262_v38  ;;  %v2672_v48 = vld [vmem:[#allocation2 + $0x150] sm:$0xff]   ;;  %v2674_v52 = vld [vmem:[#allocation2 + $0x148] sm:$0xff]   ;;  %v2676_v54 = vld [vmem:[#allocation2 + $0x140] sm:$0xff]  }
  0x44   :  { %2535 = vmatpush3.bf16.msra.mxu1 %v2641_v15  ;;  %v94_v49 = vld [vmem:[%s3201_s1 + $0x10] sm:$0xff]  ;;  %v2675_v53 = vld [vmem:[#allocation2 + $0x108] sm:$0xff]   ;;  %v2677_v55 = vld [vmem:[#allocation2 + $0x100] sm:$0xff]  }
  0x45   :  { %2536 = vmatprep.subr.bf16.mxu1 %v2644_v18  ;;  %v2264_v50 = vcombine.high %v94_v49, %v94_v49  ;;  %v2673_v51 = vld [vmem:[#allocation2 + $0x110] sm:$0xff]   ;;  %v2263_v56 = vcombine.low %v94_v49, %v94_v49  ;;  %v2683_v59 = vld [vmem:[#allocation5 + $0xe8] ss:$16 sps:$4 sm:$0xff]   ;;  %v2685_v60 = vld [vmem:[#allocation5 + $0xec] ss:$16 sps:$4 sm:$0xff]  }
  0x46   :  { %2515 = vmatpush3.bf16.msra.mxu0 %v2643_v17  ;;  %v2680_v57 = vld [vmem:[#allocation5 + $0xe0] ss:$16 sps:$4 sm:$0xff]   ;;  %v2682_v58 = vld [vmem:[#allocation5 + $0xe4] ss:$16 sps:$4 sm:$0xff]   ;;  %v2691_v62 = vld [vmem:[#allocation5 + $0xcc] ss:$16 sps:$4 sm:$0xff]  }
  0x47   :  { %2516 = vmatprep.subr.bf16.mxu0 %v2646_v20  ;;  %v2688_v61 = vld [vmem:[#allocation5 + $0xc4] ss:$16 sps:$4 sm:$0xff]   ;;  %v2686_v63 = vld [vmem:[#allocation5 + $0xc0] ss:$16 sps:$4 sm:$0xff]   ;;  %v2689_v0 = vld [vmem:[#allocation5 + $0xc8] ss:$16 sps:$4 sm:$0xff]  }
  0x48   :  { %2537 = vmatpush3.bf16.msra.mxu1 %v2645_v19  ;;  %v2694_v1 = vld [vmem:[#allocation5 + $0xa4] ss:$16 sps:$4 sm:$0xff]   ;;  %v2697_v2 = vld [vmem:[#allocation5 + $0xac] ss:$16 sps:$4 sm:$0xff]   ;;  %v2692_v3 = vld [vmem:[#allocation5 + $0xa0] ss:$16 sps:$4 sm:$0xff]  }
  0x49   :  { %2538 = vmatprep.subr.bf16.mxu1 %v2648_v22  ;;  %v2695_v4 = vld [vmem:[#allocation5 + $0xa8] ss:$16 sps:$4 sm:$0xff]   ;;  %v2700_v5 = vld [vmem:[#allocation5 + $0x84] ss:$16 sps:$4 sm:$0xff]   ;;  %v2703_v6 = vld [vmem:[#allocation5 + $0x8c] ss:$16 sps:$4 sm:$0xff]  }
  0x4a   :  { %2517 = vmatpush3.bf16.msra.mxu0 %v2647_v21  ;;  %v2698_v7 = vld [vmem:[#allocation5 + $0x80] ss:$16 sps:$4 sm:$0xff]   ;;  %v2701_v8 = vld [vmem:[#allocation5 + $0x88] ss:$16 sps:$4 sm:$0xff]   ;;  %v2706_v9 = vld [vmem:[#allocation5 + $0x64] ss:$16 sps:$4 sm:$0xff]  }
  0x4b   :  { %2518 = vmatprep.subr.bf16.mxu0 %v2650_v24  ;;  %v2709_v10 = vld [vmem:[#allocation5 + $0x6c] ss:$16 sps:$4 sm:$0xff]   ;;  %v2704_v11 = vld [vmem:[#allocation5 + $0x60] ss:$16 sps:$4 sm:$0xff]   ;;  %v2707_v12 = vld [vmem:[#allocation5 + $0x68] ss:$16 sps:$4 sm:$0xff]  }
  0x4c   :  { %2539 = vmatpush3.bf16.msra.mxu1 %v2649_v23  ;;  %v2712_v13 = vld [vmem:[#allocation5 + $0x44] ss:$16 sps:$4 sm:$0xff]   ;;  %v2715_v14 = vld [vmem:[#allocation5 + $0x4c] ss:$16 sps:$4 sm:$0xff]   ;;  %v2710_v15 = vld [vmem:[#allocation5 + $0x40] ss:$16 sps:$4 sm:$0xff]  }
  0x4d   :  { %2540 = vmatprep.subr.bf16.mxu1 %v2652_v26  ;;  %v2713_v16 = vld [vmem:[#allocation5 + $0x48] ss:$16 sps:$4 sm:$0xff]   ;;  %v2718_v17 = vld [vmem:[#allocation5 + $0x24] ss:$16 sps:$4 sm:$0xff]   ;;  %v2721_v18 = vld [vmem:[#allocation5 + $0x2c] ss:$16 sps:$4 sm:$0xff]  }
  0x4e   :  { %2519 = vmatpush3.bf16.msra.mxu0 %v2651_v25  ;;  %v2716_v19 = vld [vmem:[#allocation5 + $0x20] ss:$16 sps:$4 sm:$0xff]   ;;  %v2719_v20 = vld [vmem:[#allocation5 + $0x28] ss:$16 sps:$4 sm:$0xff]   ;;  %v2724_v21 = vld [vmem:[#allocation5 + $0x4] ss:$16 sps:$4 sm:$0xff]  }
  0x4f   :  { %2520 = vmatprep.subr.bf16.mxu0 %v2654_v28  ;;  %v2727_v22 = vld [vmem:[#allocation5 + $0xc] ss:$16 sps:$4 sm:$0xff]   ;;  %v2722_v23 = vld [vmem:[#allocation5] ss:$16 sps:$4 sm:$0xff]   ;;  %v2725_v24 = vld [vmem:[#allocation5 + $0x8] ss:$16 sps:$4 sm:$0xff]  }
  0x50   :  { %2541 = vmatpush3.bf16.msra.mxu1 %v2653_v27  ;;  %v3068_v25 = vmov 0   ;;  %v2730_v26 = vld [vmem:[#allocation7 + $0xe4] ss:$16 sps:$4 sm:$0xff]  }
  0x51   :  { %2542 = vmatprep.subr.bf16.mxu1 %v2656_v30  ;;  %v2733_v27 = vld [vmem:[#allocation7 + $0x2e4] ss:$16 sps:$4 sm:$0xff]  }
  0x52   :  { %2521 = vmatpush3.bf16.msra.mxu0 %v2655_v29 }
  0x53   :  { %2550 = vmatprep.subr.bf16.mxu0 %v2660_v35 }
  0x54   :  { %2543 = vmatpush3.bf16.msra.mxu1 %v2659_v34 }
  0x55   :  { %540 = vmatmul.mubr.bf16.vlgmr.msra.gmra.mxu0 %v2259_v32  ;;  %845 = vmatprep.subr.bf16.mxu1 %v2682_v58  ;;  %v2745_v58 = vld [vmem:[#allocation7 + $0x2a4] ss:$16 sps:$4 sm:$0xff]  }
  0x56   :  { %2551 = vmatpush3.bf16.msra.mxu0 %v2663_v39  ;;  %619 = vmatprep.mubr.bf16.mxu0 %v2264_v50  ;;  %v2728_v50 = vld [vmem:[#allocation7 + $0xe0] ss:$16 sps:$4 sm:$0xff]  }
  0x57   :  { %580 = vmatmul.mubr.bf16.vlgmr.msra.gmra.mxu1 %v2261_v37  ;;  %2552 = vmatprep.subr.bf16.mxu0 %v2664_v40  ;;  %v2258_v37 = vld [vmem:[%s3203_s3] ss:$0 sm:$0xff] }
  0x58   :  { %846 = vmatpush1.bf16.msra.mxu1 %v2680_v57  ;;  %877 = vmatprep.mubr.bf16.mxu1 %v3068_v25  ;;  %v2742_v57 = vld [vmem:[#allocation7 + $0xa4] ss:$16 sps:$4 sm:$0xff]  }
  0x59   :  { %847 = vmatprep.subr.bf16.mxu1 %v2688_v61  ;;  %v2748_v61 = vld [vmem:[#allocation7 + $0x84] ss:$16 sps:$4 sm:$0xff]  }
  0x5a   :  { %2553 = vmatpush3.bf16.msra.mxu0 %v2665_v41  ;;  %v627_v41 = vld [vmem:[%s3200_s0] sm:$0xf] }
  0x5b   :  { %2554 = vmatprep.subr.bf16.mxu0 %v2666_v42 }
  0x5c   :  { %848 = vmatpush1.bf16.msra.mxu1 %v2686_v63  ;;  %v2746_v63 = vld [vmem:[#allocation7 + $0x80] ss:$16 sps:$4 sm:$0xff]  }
  0x5d   :  { %849 = vmatprep.subr.bf16.mxu1 %v2694_v1  ;;  %v2754_v1 = vld [vmem:[#allocation7 + $0x64] ss:$16 sps:$4 sm:$0xff]  }
  0x5e   :  { %2555 = vmatpush3.bf16.msra.mxu0 %v2667_v43 }
  0x5f   :  { %2556 = vmatprep.subr.bf16.mxu0 %v2668_v44 }
  0x60   :  { %850 = vmatpush1.bf16.msra.mxu1 %v2692_v3  ;;  %v2752_v3 = vld [vmem:[#allocation7 + $0x60] ss:$16 sps:$4 sm:$0xff]  }
  0x61   :  { %851 = vmatprep.subr.bf16.mxu1 %v2700_v5  ;;  %v2760_v5 = vld [vmem:[#allocation7 + $0x44] ss:$16 sps:$4 sm:$0xff]  }
  0x62   :  { %2557 = vmatpush3.bf16.msra.mxu0 %v2669_v45  ;;  %v628_v45 = vunpack.c.l.bf16 %v627_v41  ;;  %v2814_v41 = vld [vmem:[#allocation7 + $0x124] ss:$16 sps:$4 sm:$0xff]  }
  0x63   :  { %2558 = vmatprep.subr.bf16.mxu0 %v2670_v46 }
  0x64   :  { %852 = vmatpush1.bf16.msra.mxu1 %v2698_v7  ;;  %v2758_v7 = vld [vmem:[#allocation7 + $0x40] ss:$16 sps:$4 sm:$0xff]  }
  0x65   :  { %853 = vmatprep.subr.bf16.mxu1 %v2706_v9  ;;  %v2766_v9 = vld [vmem:[#allocation7 + $0x24] ss:$16 sps:$4 sm:$0xff]  }
  0x66   :  { %2559 = vmatpush3.bf16.msra.mxu0 %v2671_v47 }
  0x67   :  { %2560 = vmatprep.subr.bf16.mxu0 %v2672_v48 }
  0x68   :  { %854 = vmatpush1.bf16.msra.mxu1 %v2704_v11  ;;  %v2764_v11 = vld [vmem:[#allocation7 + $0x20] ss:$16 sps:$4 sm:$0xff]  }
  0x69   :  { %855 = vmatprep.subr.bf16.mxu1 %v2712_v13  ;;  %v2772_v13 = vld [vmem:[#allocation7 + $0x4] ss:$16 sps:$4 sm:$0xff]  }
  0x6a   :  { %2561 = vmatpush3.bf16.msra.mxu0 %v2673_v51  ;;  %v2731_v51 = vld [vmem:[#allocation7 + $0x2e0] ss:$16 sps:$4 sm:$0xff]  }
  0x6b   :  { %2562 = vmatprep.subr.bf16.mxu0 %v2674_v52 }
  0x6c   :  { %856 = vmatpush1.bf16.msra.mxu1 %v2710_v15  ;;  %v2770_v15 = vld [vmem:[#allocation7] ss:$16 sps:$4 sm:$0xff]  }
  0x6d   :  { %857 = vmatprep.subr.bf16.mxu1 %v2718_v17  ;;  %v2778_v17 = vld [vmem:[#allocation7 + $0x1e4] ss:$16 sps:$4 sm:$0xff]  }
  0x6e   :  { %2563 = vmatpush3.bf16.msra.mxu0 %v2675_v53  ;;  %v2736_v53 = vld [vmem:[#allocation7 + $0xc4] ss:$16 sps:$4 sm:$0xff]  }
  0x6f   :  { %2564 = vmatprep.subr.bf16.mxu0 %v2676_v54  ;;  %v2739_v54 = vld [vmem:[#allocation7 + $0x2c4] ss:$16 sps:$4 sm:$0xff]  }
  0x70   :  { %858 = vmatpush1.bf16.msra.mxu1 %v2716_v19  ;;  %v2776_v19 = vld [vmem:[#allocation7 + $0x1e0] ss:$16 sps:$4 sm:$0xff]  }
  0x71   :  { %859 = vmatprep.subr.bf16.mxu1 %v2724_v21  ;;  %v2784_v21 = vld [vmem:[#allocation7 + $0x1c4] ss:$16 sps:$4 sm:$0xff]  }
  0x72   :  { %2565 = vmatpush3.bf16.msra.mxu0 %v2677_v55  ;;  %v2734_v55 = vld [vmem:[#allocation7 + $0xc0] ss:$16 sps:$4 sm:$0xff]  }
  0x73   :  { %886 = vmatprep.subr.bf16.mxu0 %v2685_v60  ;;  %v2743_v60 = vld [vmem:[#allocation7 + $0x2a0] ss:$16 sps:$4 sm:$0xff]  }
  0x74   :  { %860 = vmatpush1.bf16.msra.mxu1 %v2722_v23  ;;  %v2782_v23 = vld [vmem:[#allocation7 + $0x1c0] ss:$16 sps:$4 sm:$0xff]  }
  0x75   :  { %620 = vmatmul.mubr.bf16.vlgmr.msra.gmra.mxu0 %v2263_v56  ;;  %1725 = vmatprep.subr.bf16.mxu1 %v2730_v26  ;;  %v2737_v56 = vld [vmem:[#allocation7 + $0x2c0] ss:$16 sps:$4 sm:$0xff]   ;;  %v2793_v26 = vld [vmem:[#allocation7 + $0x3a4] ss:$16 sps:$4 sm:$0xff]  }
  0x76   :  { %887 = vmatpush1.bf16.msra.mxu0 %v2683_v59  ;;  %918 = vmatprep.mubr.bf16.mxu0 %v3068_v25  ;;  %v2740_v59 = vld [vmem:[#allocation7 + $0xa0] ss:$16 sps:$4 sm:$0xff]   ;;  %v2790_v25 = vld [vmem:[#allocation7 + $0x1a4] ss:$16 sps:$4 sm:$0xff]  }
  0x77   :  { %888 = vmatprep.subr.bf16.mxu0 %v2691_v62  ;;  %v2751_v62 = vld [vmem:[#allocation7 + $0x284] ss:$16 sps:$4 sm:$0xff]  }
  0x7a   :  { %889 = vmatpush1.bf16.msra.mxu0 %v2689_v0  ;;  %v2749_v0 = vld [vmem:[#allocation7 + $0x280] ss:$16 sps:$4 sm:$0xff]  }
  0x7b   :  { %890 = vmatprep.subr.bf16.mxu0 %v2697_v2  ;;  %v2757_v2 = vld [vmem:[#allocation7 + $0x264] ss:$16 sps:$4 sm:$0xff]  }
  0x7e   :  { %891 = vmatpush1.bf16.msra.mxu0 %v2695_v4  ;;  %v2755_v4 = vld [vmem:[#allocation7 + $0x260] ss:$16 sps:$4 sm:$0xff]  }
  0x7f   :  { %892 = vmatprep.subr.bf16.mxu0 %v2703_v6  ;;  %v2763_v6 = vld [vmem:[#allocation7 + $0x244] ss:$16 sps:$4 sm:$0xff]  }
  0x82   :  { %893 = vmatpush1.bf16.msra.mxu0 %v2701_v8  ;;  %v2761_v8 = vld [vmem:[#allocation7 + $0x240] ss:$16 sps:$4 sm:$0xff]  }
  0x83   :  { %894 = vmatprep.subr.bf16.mxu0 %v2709_v10  ;;  %v2769_v10 = vld [vmem:[#allocation7 + $0x224] ss:$16 sps:$4 sm:$0xff]  }
  0x86   :  { %895 = vmatpush1.bf16.msra.mxu0 %v2707_v12  ;;  %v2767_v12 = vld [vmem:[#allocation7 + $0x220] ss:$16 sps:$4 sm:$0xff]  }
  0x87   :  { %896 = vmatprep.subr.bf16.mxu0 %v2715_v14  ;;  %v2775_v14 = vld [vmem:[#allocation7 + $0x204] ss:$16 sps:$4 sm:$0xff]  }
  0x8a   :  { %897 = vmatpush1.bf16.msra.mxu0 %v2713_v16  ;;  %v2773_v16 = vld [vmem:[#allocation7 + $0x200] ss:$16 sps:$4 sm:$0xff]  }
  0x8b   :  { %898 = vmatprep.subr.bf16.mxu0 %v2721_v18  ;;  %v2781_v18 = vld [vmem:[#allocation7 + $0x3e4] ss:$16 sps:$4 sm:$0xff]  }
  0x8e   :  { %899 = vmatpush1.bf16.msra.mxu0 %v2719_v20  ;;  %v2779_v20 = vld [vmem:[#allocation7 + $0x3e0] ss:$16 sps:$4 sm:$0xff]  }
  0x8f   :  { %900 = vmatprep.subr.bf16.mxu0 %v2727_v22  ;;  %v2787_v22 = vld [vmem:[#allocation7 + $0x3c4] ss:$16 sps:$4 sm:$0xff]  }
  0x92   :  { %901 = vmatpush1.bf16.msra.mxu0 %v2725_v24  ;;  %v2785_v24 = vld [vmem:[#allocation7 + $0x3c0] ss:$16 sps:$4 sm:$0xff]  }
  0x93   :  { %1766 = vmatprep.subr.bf16.mxu0 %v2733_v27  ;;  %v2788_v27 = vld [vmem:[#allocation7 + $0x1a0] ss:$16 sps:$4 sm:$0xff]  }
 0x115   :  { %v2522_v28 = vpop.f32.mrf.mxu0 }
 0x117   :  { %v2523_v29 = vpop.f32.mrf.mxu0  ;;  %v2544_v30 = vpop.f32.mrf.mxu1 }
 0x118   :  { %v2524_v36 = vadd.f32 %v2523_v29, %v2522_v28  ;;  %v2791_v28 = vld [vmem:[#allocation7 + $0x3a0] ss:$16 sps:$4 sm:$0xff]   ;;  %v2796_v29 = vld [vmem:[#allocation7 + $0x184] ss:$16 sps:$4 sm:$0xff]  }
 0x119   :  { %v2525_v31 = vpop.f32.mrf.mxu0  ;;  %v2545_v32 = vpop.f32.mrf.mxu1 }
 0x11a   :  { %v542_v38 = vadd.f32 %v2524_v36, %v2258_v37  ;;  %v2546_v39 = vadd.f32 %v2545_v32, %v2544_v30  ;;  %v2799_v30 = vld [vmem:[#allocation7 + $0x384] ss:$16 sps:$4 sm:$0xff]   ;;  %v2794_v31 = vld [vmem:[#allocation7 + $0x180] ss:$16 sps:$4 sm:$0xff]  }
 0x11b   :  { %v2526_v33 = vpop.f32.mrf.mxu0  ;;  %v2547_v34 = vpop.f32.mrf.mxu1  ;;  %v2797_v32 = vld [vmem:[#allocation7 + $0x380] ss:$16 sps:$4 sm:$0xff]   ;;  %v2808_v37 = vld [vmem:[#allocation7 + $0x144] ss:$16 sps:$4 sm:$0xff]  }
 0x11c   :  { %v582_v43 = vadd.f32 %v2546_v39, %v542_v38  ;;  %v2802_v33 = vld [vmem:[#allocation7 + $0x164] ss:$16 sps:$4 sm:$0xff]   ;;  %v2803_v36 = vld [vmem:[#allocation7 + $0x360] ss:$16 sps:$4 sm:$0xff]  }
 0x11d   :  { %v2548_v35 = vpop.f32.mrf.mxu1  ;;  %v2805_v34 = vld [vmem:[#allocation7 + $0x364] ss:$16 sps:$4 sm:$0xff]   ;;  %v2806_v39 = vld [vmem:[#allocation7 + $0x140] ss:$16 sps:$4 sm:$0xff]  }
 0x11e   :  { %v2800_v35 = vld [vmem:[#allocation7 + $0x160] ss:$16 sps:$4 sm:$0xff]   ;;  %v2811_v38 = vld [vmem:[#allocation7 + $0x344] ss:$16 sps:$4 sm:$0xff]  }
 0x135   :  { %v2566_v40 = vpop.f32.mrf.mxu0 }
 0x137   :  { %v2567_v42 = vpop.f32.mrf.mxu0 }
 0x138   :  { %v2568_v44 = vadd.f32 %v2567_v42, %v2566_v40  ;;  %v2809_v40 = vld [vmem:[#allocation7 + $0x340] ss:$16 sps:$4 sm:$0xff]   ;;  %v2817_v42 = vld [vmem:[#allocation7 + $0x324] ss:$16 sps:$4 sm:$0xff]  }
 0x139   :  { %v2569_v46 = vpop.f32.mrf.mxu0 }
 0x13a   :  { %v622_v47 = vadd.f32 %v2568_v44, %v582_v43  ;;  %v2812_v43 = vld [vmem:[#allocation7 + $0x120] ss:$16 sps:$4 sm:$0xff]   ;;  %v2823_v46 = vld [vmem:[#allocation7 + $0x304] ss:$16 sps:$4 sm:$0xff]  }
 0x13b   :  { %v2570_v48 = vpop.f32.mrf.mxu0  ;;  %v2815_v44 = vld [vmem:[#allocation7 + $0x320] ss:$16 sps:$4 sm:$0xff]  }
 0x13c   :  { %v629_v49 = vadd.f32 %v628_v45, %v622_v47  ;;  %v2820_v45 = vld [vmem:[#allocation7 + $0x104] ss:$16 sps:$4 sm:$0xff]   ;;  %v2818_v47 = vld [vmem:[#allocation7 + $0x100] ss:$16 sps:$4 sm:$0xff]  }
 0x13d   :  { %v2821_v48 = vld [vmem:[#allocation7 + $0x300] ss:$16 sps:$4 sm:$0xff]  }
 0x13e   :  { %v630_v52 = vpack.c.bf16 %v629_v49, %v629_v49  ;;  %v2826_v49 = vld [vmem:[#allocation7 + $0xec] ss:$16 sps:$4 sm:$0xff]  }
 0x140   :  { %878 = vmatmul.mubr.bf16.vlgmr.msra.gmra.mxu1 %v630_v52  ;;  %919 = vmatmul.mubr.bf16.vlgmr.msra.gmra.mxu0 %v630_v52 }
 0x141   :  { %1726 = vmatpush1.bf16.msra.mxu1 %v2728_v50  ;;  %1767 = vmatpush1.bf16.msra.mxu0 %v2731_v51  ;;  %v2829_v50 = vld [vmem:[#allocation7 + $0x2ec] ss:$16 sps:$4 sm:$0xff]   ;;  %v665_v51 = vlaneseq }
 0x142   :  { %1727 = vmatprep.subr.bf16.mxu1 %v2736_v53  ;;  %1768 = vmatprep.subr.bf16.mxu0 %v2739_v54 }
 0x143   :  { %v3158_v52 = vshrl.u32 %v665_v51, 7  ;;  %v2875_v51 = vld [vmem:[#allocation7 + $0x3e8] ss:$16 sps:$4 sm:$0xff]  }
 0x145   :  { %1728 = vmatpush1.bf16.msra.mxu1 %v2734_v55  ;;  %1769 = vmatpush1.bf16.msra.mxu0 %v2737_v56  ;;  %v667_v53 = vsub.s32 0, %v3158_v52  ;;  %v675_v54 = vsub.s32 2, %v3158_v52  ;;  %v663_v55 = vld [vmem:[%s3205_s5] sm:$0xf]  ;;  %v671_v56 = vsub.s32 1, %v3158_v52 }
 0x146   :  { %1729 = vmatprep.subr.bf16.mxu1 %v2742_v57  ;;  %1770 = vmatprep.subr.bf16.mxu0 %v2745_v58  ;;  %v679_v57 = vsub.s32 3, %v3158_v52 }
 0x147   :  { %v668_v58 = vrot.slane %v663_v55, %v667_v53 }
 0x149   :  { %1730 = vmatpush1.bf16.msra.mxu1 %v2740_v59  ;;  %1771 = vmatpush1.bf16.msra.mxu0 %v2743_v60  ;;  %v676_v59 = vrot.slane %v663_v55, %v675_v54  ;;  %v672_v60 = vrot.slane %v663_v55, %v671_v56 }
 0x14a   :  { %1731 = vmatprep.subr.bf16.mxu1 %v2748_v61  ;;  %1772 = vmatprep.subr.bf16.mxu0 %v2751_v62  ;;  %v680_v61 = vrot.slane %v663_v55, %v679_v57  ;;  %v2880_v55 = vld [vmem:[#allocation7 + $0x1cc] ss:$16 sps:$4 sm:$0xff]  }
 0x14d   :  { %1732 = vmatpush1.bf16.msra.mxu1 %v2746_v63  ;;  %1773 = vmatpush1.bf16.msra.mxu0 %v2749_v0 }
 0x14e   :  { %1733 = vmatprep.subr.bf16.mxu1 %v2754_v1  ;;  %1774 = vmatprep.subr.bf16.mxu0 %v2757_v2 }
 0x151   :  { %1734 = vmatpush1.bf16.msra.mxu1 %v2752_v3  ;;  %1775 = vmatpush1.bf16.msra.mxu0 %v2755_v4 }
 0x152   :  { %1735 = vmatprep.subr.bf16.mxu1 %v2760_v5  ;;  %1776 = vmatprep.subr.bf16.mxu0 %v2763_v6 }
 0x155   :  { %1736 = vmatpush1.bf16.msra.mxu1 %v2758_v7  ;;  %1777 = vmatpush1.bf16.msra.mxu0 %v2761_v8 }
 0x156   :  { %1737 = vmatprep.subr.bf16.mxu1 %v2766_v9  ;;  %1778 = vmatprep.subr.bf16.mxu0 %v2769_v10 }
 0x159   :  { %1738 = vmatpush1.bf16.msra.mxu1 %v2764_v11  ;;  %1779 = vmatpush1.bf16.msra.mxu0 %v2767_v12 }
 0x15a   :  { %1739 = vmatprep.subr.bf16.mxu1 %v2772_v13  ;;  %1780 = vmatprep.subr.bf16.mxu0 %v2775_v14 }
 0x15d   :  { %1740 = vmatpush1.bf16.msra.mxu1 %v2770_v15  ;;  %1781 = vmatpush1.bf16.msra.mxu0 %v2773_v16  ;;  %v2824_v16 = vld [vmem:[#allocation7 + $0xe8] ss:$16 sps:$4 sm:$0xff]  }
 0x15e   :  { %1741 = vmatprep.subr.bf16.mxu1 %v2778_v17  ;;  %1782 = vmatprep.subr.bf16.mxu0 %v2781_v18  ;;  %v2827_v17 = vld [vmem:[#allocation7 + $0x2e8] ss:$16 sps:$4 sm:$0xff]  }
 0x161   :  { %1742 = vmatpush2.bf16.msra.mxu1 %v2776_v19  ;;  %1783 = vmatpush2.bf16.msra.mxu0 %v2779_v20  ;;  %v2832_v20 = vld [vmem:[#allocation7 + $0xcc] ss:$16 sps:$4 sm:$0xff]  }
 0x162   :  { %1743 = vmatprep.subr.bf16.mxu1 %v2784_v21  ;;  %1784 = vmatprep.subr.bf16.mxu0 %v2787_v22  ;;  %v2835_v21 = vld [vmem:[#allocation7 + $0x2cc] ss:$16 sps:$4 sm:$0xff]   ;;  %v2830_v22 = vld [vmem:[#allocation7 + $0xc8] ss:$16 sps:$4 sm:$0xff]  }
 0x165   :  { %1744 = vmatpush2.bf16.msra.mxu1 %v2782_v23  ;;  %1785 = vmatpush2.bf16.msra.mxu0 %v2785_v24  ;;  %v2833_v23 = vld [vmem:[#allocation7 + $0x2c8] ss:$16 sps:$4 sm:$0xff]   ;;  %v2838_v24 = vld [vmem:[#allocation7 + $0xac] ss:$16 sps:$4 sm:$0xff]  }
 0x166   :  { %1745 = vmatprep.subr.bf16.mxu1 %v2790_v25  ;;  %1786 = vmatprep.subr.bf16.mxu0 %v2793_v26  ;;  %v2841_v25 = vld [vmem:[#allocation7 + $0x2ac] ss:$16 sps:$4 sm:$0xff]   ;;  %v2836_v26 = vld [vmem:[#allocation7 + $0xa8] ss:$16 sps:$4 sm:$0xff]  }
 0x169   :  { %1746 = vmatpush2.bf16.msra.mxu1 %v2788_v27  ;;  %1787 = vmatpush2.bf16.msra.mxu0 %v2791_v28  ;;  %v2839_v27 = vld [vmem:[#allocation7 + $0x2a8] ss:$16 sps:$4 sm:$0xff]   ;;  %v2844_v28 = vld [vmem:[#allocation7 + $0x8c] ss:$16 sps:$4 sm:$0xff]  }
 0x16a   :  { %1747 = vmatprep.subr.bf16.mxu1 %v2796_v29  ;;  %1788 = vmatprep.subr.bf16.mxu0 %v2799_v30  ;;  %v2847_v29 = vld [vmem:[#allocation7 + $0x28c] ss:$16 sps:$4 sm:$0xff]   ;;  %v2842_v30 = vld [vmem:[#allocation7 + $0x88] ss:$16 sps:$4 sm:$0xff]  }
 0x16d   :  { %1748 = vmatpush2.bf16.msra.mxu1 %v2794_v31  ;;  %1789 = vmatpush2.bf16.msra.mxu0 %v2797_v32  ;;  %v2845_v31 = vld [vmem:[#allocation7 + $0x288] ss:$16 sps:$4 sm:$0xff]   ;;  %v2850_v32 = vld [vmem:[#allocation7 + $0x6c] ss:$16 sps:$4 sm:$0xff]  }
 0x16e   :  { %1749 = vmatprep.subr.bf16.mxu1 %v2802_v33  ;;  %1790 = vmatprep.subr.bf16.mxu0 %v2805_v34  ;;  %v2853_v33 = vld [vmem:[#allocation7 + $0x26c] ss:$16 sps:$4 sm:$0xff]   ;;  %v2848_v34 = vld [vmem:[#allocation7 + $0x68] ss:$16 sps:$4 sm:$0xff]  }
 0x171   :  { %1750 = vmatpush2.bf16.msra.mxu1 %v2800_v35  ;;  %1791 = vmatpush2.bf16.msra.mxu0 %v2803_v36  ;;  %v2851_v35 = vld [vmem:[#allocation7 + $0x268] ss:$16 sps:$4 sm:$0xff]   ;;  %v2856_v36 = vld [vmem:[#allocation7 + $0x4c] ss:$16 sps:$4 sm:$0xff]  }
 0x172   :  { %1751 = vmatprep.subr.bf16.mxu1 %v2808_v37  ;;  %1792 = vmatprep.subr.bf16.mxu0 %v2811_v38  ;;  %v2859_v37 = vld [vmem:[#allocation7 + $0x24c] ss:$16 sps:$4 sm:$0xff]   ;;  %v2854_v38 = vld [vmem:[#allocation7 + $0x48] ss:$16 sps:$4 sm:$0xff]  }
 0x175   :  { %1752 = vmatpush2.bf16.msra.mxu1 %v2806_v39  ;;  %1793 = vmatpush2.bf16.msra.mxu0 %v2809_v40  ;;  %v2857_v39 = vld [vmem:[#allocation7 + $0x248] ss:$16 sps:$4 sm:$0xff]   ;;  %v2862_v40 = vld [vmem:[#allocation7 + $0x2c] ss:$16 sps:$4 sm:$0xff]  }
 0x176   :  { %1753 = vmatprep.subr.bf16.mxu1 %v2814_v41  ;;  %1794 = vmatprep.subr.bf16.mxu0 %v2817_v42  ;;  %v2865_v41 = vld [vmem:[#allocation7 + $0x22c] ss:$16 sps:$4 sm:$0xff]   ;;  %v2860_v42 = vld [vmem:[#allocation7 + $0x28] ss:$16 sps:$4 sm:$0xff]  }
 0x179   :  { %1754 = vmatpush2.bf16.msra.mxu1 %v2812_v43  ;;  %1795 = vmatpush2.bf16.msra.mxu0 %v2815_v44  ;;  %v2863_v43 = vld [vmem:[#allocation7 + $0x228] ss:$16 sps:$4 sm:$0xff]   ;;  %v2868_v44 = vld [vmem:[#allocation7 + $0xc] ss:$16 sps:$4 sm:$0xff]  }
 0x17a   :  { %1755 = vmatprep.subr.bf16.mxu1 %v2820_v45  ;;  %1796 = vmatprep.subr.bf16.mxu0 %v2823_v46  ;;  %v2871_v45 = vld [vmem:[#allocation7 + $0x20c] ss:$16 sps:$4 sm:$0xff]   ;;  %v2866_v46 = vld [vmem:[#allocation7 + $0x8] ss:$16 sps:$4 sm:$0xff]  }
 0x17d   :  { %1756 = vmatpush2.bf16.msra.mxu1 %v2818_v47  ;;  %1797 = vmatpush2.bf16.msra.mxu0 %v2821_v48  ;;  %v2869_v47 = vld [vmem:[#allocation7 + $0x208] ss:$16 sps:$4 sm:$0xff]   ;;  %v2874_v48 = vld [vmem:[#allocation7 + $0x1ec] ss:$16 sps:$4 sm:$0xff]  }
 0x17e   :  { %1807 = vmatprep.subr.bf16.mxu1 %v2826_v49  ;;  %1848 = vmatprep.subr.bf16.mxu0 %v2829_v50  ;;  %v2877_v49 = vld [vmem:[#allocation7 + $0x3ec] ss:$16 sps:$4 sm:$0xff]   ;;  %v2872_v50 = vld [vmem:[#allocation7 + $0x1e8] ss:$16 sps:$4 sm:$0xff]  }
 0x200   :  { %v879_v62 = vpop.f32.mrf.mxu1  ;;  %v920_v63 = vpop.f32.mrf.mxu0 }
 0x201   :  { %v880_v0 = vadd.f32 %v879_v62, %v668_v58  ;;  %v921_v1 = vadd.f32 %v920_v63, %v676_v59  ;;  %v2883_v58 = vld [vmem:[#allocation7 + $0x3cc] ss:$16 sps:$4 sm:$0xff]   ;;  %v2878_v59 = vld [vmem:[#allocation7 + $0x1c8] ss:$16 sps:$4 sm:$0xff]  }
 0x202   :  { %v881_v2 = vpop.f32.mrf.mxu1  ;;  %v922_v3 = vpop.f32.mrf.mxu0  ;;  %v2889_v62 = vld [vmem:[#allocation7 + $0x3ac] ss:$16 sps:$4 sm:$0xff]   ;;  %v2884_v63 = vld [vmem:[#allocation7 + $0x1a8] ss:$16 sps:$4 sm:$0xff]  }
 0x203   :  { %v882_v4 = vadd.f32 %v881_v2, %v672_v60  ;;  %v923_v5 = vadd.f32 %v922_v3, %v680_v61  ;;  %v927_v6 = vmax.f32 %v880_v0, 0.0  ;;  %v929_v7 = vmax.f32 %v921_v1, 0.0  ;;  %v2881_v60 = vld [vmem:[#allocation7 + $0x3c8] ss:$16 sps:$4 sm:$0xff]   ;;  %v2886_v61 = vld [vmem:[#allocation7 + $0x1ac] ss:$16 sps:$4 sm:$0xff]  }
 0x204   :  { %v883_v8 = vpop.f32.mrf.mxu1  ;;  %v924_v9 = vpop.f32.mrf.mxu0  ;;  %v2887_v0 = vld [vmem:[#allocation7 + $0x3a8] ss:$16 sps:$4 sm:$0xff]   ;;  %v2892_v1 = vld [vmem:[#allocation7 + $0x18c] ss:$16 sps:$4 sm:$0xff]  }
 0x205   :  { %v928_v10 = vmax.f32 %v882_v4, 0.0  ;;  %v930_v11 = vmax.f32 %v923_v5, 0.0  ;;  %v3175_v18 = vpack.c.bf16 %v927_v6, %v927_v6  ;;  %v3177_v19 = vpack.c.bf16 %v929_v7, %v929_v7  ;;  %v2895_v2 = vld [vmem:[#allocation7 + $0x38c] ss:$16 sps:$4 sm:$0xff]   ;;  %v2890_v3 = vld [vmem:[#allocation7 + $0x188] ss:$16 sps:$4 sm:$0xff]  }
 0x206   :  { %v884_v12 = vpop.f32.mrf.mxu1  ;;  %v925_v13 = vpop.f32.mrf.mxu0  ;;  %v2893_v4 = vld [vmem:[#allocation7 + $0x388] ss:$16 sps:$4 sm:$0xff]   ;;  %v2898_v5 = vld [vmem:[#allocation7 + $0x16c] ss:$16 sps:$4 sm:$0xff]  }
 0x207   :  { %v932_v14 = vpack.c.bf16 %v928_v10, %v928_v10  ;;  %v934_v15 = vpack.c.bf16 %v930_v11, %v930_v11  ;;  %v2901_v6 = vld [vmem:[#allocation7 + $0x36c] ss:$16 sps:$4 sm:$0xff]   ;;  %v2896_v7 = vld [vmem:[#allocation7 + $0x168] ss:$16 sps:$4 sm:$0xff]  }
 0x208   :  { %v2899_v8 = vld [vmem:[#allocation7 + $0x368] ss:$16 sps:$4 sm:$0xff]   ;;  %v2904_v9 = vld [vmem:[#allocation7 + $0x14c] ss:$16 sps:$4 sm:$0xff]  }
 0x209   :  { %1757 = vmatprep.mubr.bf16.mxu1 %v932_v14  ;;  %1798 = vmatprep.mubr.bf16.mxu0 %v934_v15  ;;  %v2907_v10 = vld [vmem:[#allocation7 + $0x34c] ss:$16 sps:$4 sm:$0xff]   ;;  %v2902_v11 = vld [vmem:[#allocation7 + $0x148] ss:$16 sps:$4 sm:$0xff]  }
 0x20a   :  { %1758 = vmatmul.mubr.bf16.vlgmr.msra.gmra.mxu1 %v3175_v18  ;;  %1799 = vmatmul.mubr.bf16.vlgmr.msra.gmra.mxu0 %v3177_v19  ;;  %v2905_v12 = vld [vmem:[#allocation7 + $0x348] ss:$16 sps:$4 sm:$0xff]   ;;  %v2910_v13 = vld [vmem:[#allocation7 + $0x12c] ss:$16 sps:$4 sm:$0xff]  }
 0x20b   :  { %1808 = vmatpush1.bf16.msra.mxu1 %v2824_v16  ;;  %1849 = vmatpush1.bf16.msra.mxu0 %v2827_v17  ;;  %v2911_v16 = vld [vmem:[#allocation7 + $0x328] ss:$16 sps:$4 sm:$0xff]   ;;  %v2916_v17 = vld [vmem:[#allocation7 + $0x10c] ss:$16 sps:$4 sm:$0xff]  }
 0x20c   :  { %1839 = vmatprep.mubr.bf16.mxu1 %v932_v14  ;;  %1880 = vmatprep.mubr.bf16.mxu0 %v934_v15  ;;  %v2913_v14 = vld [vmem:[#allocation7 + $0x32c] ss:$16 sps:$4 sm:$0xff]   ;;  %v2908_v15 = vld [vmem:[#allocation7 + $0x128] ss:$16 sps:$4 sm:$0xff]  }
 0x20d   :  { %1809 = vmatprep.subr.bf16.mxu1 %v2832_v20  ;;  %1850 = vmatprep.subr.bf16.mxu0 %v2835_v21  ;;  %v2919_v20 = vld [vmem:[#allocation7 + $0x30c] ss:$16 sps:$4 sm:$0xff]   ;;  %v2914_v21 = vld [vmem:[#allocation7 + $0x108] ss:$16 sps:$4 sm:$0xff]  }
 0x20f   :  { %1810 = vmatpush1.bf16.msra.mxu1 %v2830_v22  ;;  %1851 = vmatpush1.bf16.msra.mxu0 %v2833_v23  ;;  %v2917_v22 = vld [vmem:[#allocation7 + $0x308] ss:$16 sps:$4 sm:$0xff]  }
 0x210   :  { %1811 = vmatprep.subr.bf16.mxu1 %v2838_v24  ;;  %1852 = vmatprep.subr.bf16.mxu0 %v2841_v25  ;;  %v2920_v23 = vld [vmem:[#allocation8 + $0x78] sm:$0xff]   ;;  %v2922_v25 = vld [vmem:[#allocation8 + $0x70] sm:$0xff]  }
 0x211   :  { %v2921_v24 = vld [vmem:[#allocation8 + $0x38] sm:$0xff]  }
 0x213   :  { %1812 = vmatpush1.bf16.msra.mxu1 %v2836_v26  ;;  %1853 = vmatpush1.bf16.msra.mxu0 %v2839_v27  ;;  %v2923_v26 = vld [vmem:[#allocation8 + $0x30] sm:$0xff]   ;;  %v2924_v27 = vld [vmem:[#allocation8 + $0x68] sm:$0xff]  }
 0x214   :  { %1813 = vmatprep.subr.bf16.mxu1 %v2844_v28  ;;  %1854 = vmatprep.subr.bf16.mxu0 %v2847_v29  ;;  %v2925_v28 = vld [vmem:[#allocation8 + $0x28] sm:$0xff]   ;;  %v2926_v29 = vld [vmem:[#allocation8 + $0x60] sm:$0xff]  }
 0x217   :  { %1814 = vmatpush1.bf16.msra.mxu1 %v2842_v30  ;;  %1855 = vmatpush1.bf16.msra.mxu0 %v2845_v31  ;;  %v2927_v30 = vld [vmem:[#allocation8 + $0x20] sm:$0xff]   ;;  %v2928_v31 = vld [vmem:[#allocation8 + $0x58] sm:$0xff]  }
 0x218   :  { %1815 = vmatprep.subr.bf16.mxu1 %v2850_v32  ;;  %1856 = vmatprep.subr.bf16.mxu0 %v2853_v33  ;;  %v2936_v32 = vld [vmem:[#allocation8 + $0xf8] sm:$0xff]  }
 0x219   :  { %v2937_v33 = vld [vmem:[#allocation8 + $0xb8] sm:$0xff]  }
 0x21b   :  { %1816 = vmatpush1.bf16.msra.mxu1 %v2848_v34  ;;  %1857 = vmatpush1.bf16.msra.mxu0 %v2851_v35  ;;  %v2938_v34 = vld [vmem:[#allocation8 + $0xf0] sm:$0xff]   ;;  %v2929_v35 = vld [vmem:[#allocation8 + $0x18] sm:$0xff]  }
 0x21c   :  { %1817 = vmatprep.subr.bf16.mxu1 %v2856_v36  ;;  %1858 = vmatprep.subr.bf16.mxu0 %v2859_v37  ;;  %v2940_v36 = vld [vmem:[#allocation8 + $0xe8] sm:$0xff]   ;;  %v2931_v37 = vld [vmem:[#allocation8 + $0x10] sm:$0xff]  }
 0x21f   :  { %1818 = vmatpush1.bf16.msra.mxu1 %v2854_v38  ;;  %1859 = vmatpush1.bf16.msra.mxu0 %v2857_v39  ;;  %v2932_v38 = vld [vmem:[#allocation8 + $0x48] sm:$0xff]  }
 0x220   :  { %1819 = vmatprep.subr.bf16.mxu1 %v2862_v40  ;;  %1860 = vmatprep.subr.bf16.mxu0 %v2865_v41  ;;  %v2941_v39 = vld [vmem:[#allocation8 + $0xa8] sm:$0xff]   ;;  %v2942_v40 = vld [vmem:[#allocation8 + $0xe0] sm:$0xff]  }
 0x221   :  { %v2933_v41 = vld [vmem:[#allocation8 + $0x8] sm:$0xff]  }
 0x223   :  { %1820 = vmatpush1.bf16.msra.mxu1 %v2860_v42  ;;  %1861 = vmatpush1.bf16.msra.mxu0 %v2863_v43  ;;  %v2934_v42 = vld [vmem:[#allocation8 + $0x40] sm:$0xff]  }
 0x224   :  { %1821 = vmatprep.subr.bf16.mxu1 %v2868_v44  ;;  %1862 = vmatprep.subr.bf16.mxu0 %v2871_v45  ;;  %v2943_v43 = vld [vmem:[#allocation8 + $0xa0] sm:$0xff]   ;;  %v2944_v44 = vld [vmem:[#allocation8 + $0xd8] sm:$0xff]  }
 0x225   :  { %v2935_v45 = vld [vmem:[#allocation8] sm:$0xff]  }
 0x227   :  { %1822 = vmatpush1.bf16.msra.mxu1 %v2866_v46  ;;  %1863 = vmatpush1.bf16.msra.mxu0 %v2869_v47  ;;  %v2945_v46 = vld [vmem:[#allocation8 + $0x98] sm:$0xff]   ;;  %v2946_v47 = vld [vmem:[#allocation8 + $0xd0] sm:$0xff]  }
 0x228   :  { %1823 = vmatprep.subr.bf16.mxu1 %v2874_v48  ;;  %1864 = vmatprep.subr.bf16.mxu0 %v2877_v49  ;;  %v2947_v48 = vld [vmem:[#allocation8 + $0x90] sm:$0xff]   ;;  %v2948_v49 = vld [vmem:[#allocation8 + $0xc8] sm:$0xff]  }
 0x22b   :  { %1824 = vmatpush2.bf16.msra.mxu1 %v2872_v50  ;;  %1865 = vmatpush2.bf16.msra.mxu0 %v2875_v51  ;;  %v2949_v50 = vld [vmem:[#allocation8 + $0x88] sm:$0xff]   ;;  %v2950_v51 = vld [vmem:[#allocation8 + $0xc0] sm:$0xff]  }
 0x22c   :  { %1825 = vmatprep.subr.bf16.mxu1 %v2880_v55  ;;  %1866 = vmatprep.subr.bf16.mxu0 %v2883_v58  ;;  %v2951_v55 = vld [vmem:[#allocation8 + $0x80] sm:$0xff]  }
 0x22d   :  { %v1063_v58 = vld [vmem:[%s3207_s7] sm:$0xf] }
 0x22f   :  { %1826 = vmatpush2.bf16.msra.mxu1 %v2878_v59  ;;  %1867 = vmatpush2.bf16.msra.mxu0 %v2881_v60  ;;  %v1068_v59 = vrot.slane %v1063_v58, %v667_v53  ;;  %v1072_v60 = vrot.slane %v1063_v58, %v671_v56  ;;  %v1076_v53 = vrot.slane %v1063_v58, %v675_v54 }
 0x230   :  { %1827 = vmatprep.subr.bf16.mxu1 %v2886_v61  ;;  %1868 = vmatprep.subr.bf16.mxu0 %v2889_v62  ;;  %v1080_v56 = vrot.slane %v1063_v58, %v679_v57 }
 0x233   :  { %1828 = vmatpush2.bf16.msra.mxu1 %v2884_v63  ;;  %1869 = vmatpush2.bf16.msra.mxu0 %v2887_v0 }
 0x234   :  { %1829 = vmatprep.subr.bf16.mxu1 %v2892_v1  ;;  %1870 = vmatprep.subr.bf16.mxu0 %v2895_v2 }
 0x237   :  { %1830 = vmatpush2.bf16.msra.mxu1 %v2890_v3  ;;  %1871 = vmatpush2.bf16.msra.mxu0 %v2893_v4 }
 0x238   :  { %1831 = vmatprep.subr.bf16.mxu1 %v2898_v5  ;;  %1872 = vmatprep.subr.bf16.mxu0 %v2901_v6 }
 0x23b   :  { %1832 = vmatpush2.bf16.msra.mxu1 %v2896_v7  ;;  %1873 = vmatpush2.bf16.msra.mxu0 %v2899_v8 }
 0x23c   :  { %1833 = vmatprep.subr.bf16.mxu1 %v2904_v9  ;;  %1874 = vmatprep.subr.bf16.mxu0 %v2907_v10 }
 0x23f   :  { %1834 = vmatpush2.bf16.msra.mxu1 %v2902_v11  ;;  %1875 = vmatpush2.bf16.msra.mxu0 %v2905_v12 }
 0x240   :  { %1835 = vmatprep.subr.bf16.mxu1 %v2910_v13  ;;  %1876 = vmatprep.subr.bf16.mxu0 %v2913_v14 }
 0x243   :  { %1836 = vmatpush2.bf16.msra.mxu1 %v2908_v15  ;;  %1877 = vmatpush2.bf16.msra.mxu0 %v2911_v16 }
 0x244   :  { %1837 = vmatprep.subr.bf16.mxu1 %v2916_v17  ;;  %1878 = vmatprep.subr.bf16.mxu0 %v2919_v20 }
 0x247   :  { %1838 = vmatpush2.bf16.msra.mxu1 %v2914_v21  ;;  %1879 = vmatpush2.bf16.msra.mxu0 %v2917_v22 }
 0x248   :  { %2572 = vmatprep.subr.bf16.mxu1 %v2920_v23  ;;  %2594 = vmatprep.subr.bf16.mxu0 %v2936_v32 }
 0x24a   :  { %1840 = vmatmul.mubr.bf16.vlgmr.msra.gmra.mxu1 %v3175_v18  ;;  %1881 = vmatmul.mubr.bf16.vlgmr.msra.gmra.mxu0 %v3177_v19  ;;  %v2930_v18 = vld [vmem:[#allocation8 + $0x50] sm:$0xff]  }
 0x24b   :  { %2573 = vmatpush3.bf16.msra.mxu1 %v2921_v24  ;;  %2595 = vmatpush3.bf16.msra.mxu0 %v2937_v33  ;;  %v2939_v19 = vld [vmem:[#allocation8 + $0xb0] sm:$0xff]   ;;  %v2473_v33 = vld [vmem:[%s3209_s9] ss:$0 sm:$0xff] }
 0x24c   :  { %2574 = vmatprep.subr.bf16.mxu1 %v2922_v25  ;;  %2596 = vmatprep.subr.bf16.mxu0 %v2938_v34 }
 0x24f   :  { %2575 = vmatpush3.bf16.msra.mxu1 %v2923_v26  ;;  %2597 = vmatpush3.bf16.msra.mxu0 %v2939_v19 }
 0x250   :  { %2576 = vmatprep.subr.bf16.mxu1 %v2924_v27  ;;  %2598 = vmatprep.subr.bf16.mxu0 %v2940_v36 }
 0x253   :  { %2577 = vmatpush3.bf16.msra.mxu1 %v2925_v28  ;;  %2599 = vmatpush3.bf16.msra.mxu0 %v2941_v39 }
 0x254   :  { %2578 = vmatprep.subr.bf16.mxu1 %v2926_v29  ;;  %2600 = vmatprep.subr.bf16.mxu0 %v2942_v40 }
 0x257   :  { %2579 = vmatpush3.bf16.msra.mxu1 %v2927_v30  ;;  %2601 = vmatpush3.bf16.msra.mxu0 %v2943_v43 }
 0x258   :  { %2580 = vmatprep.subr.bf16.mxu1 %v2928_v31  ;;  %2602 = vmatprep.subr.bf16.mxu0 %v2944_v44 }
 0x25b   :  { %2581 = vmatpush3.bf16.msra.mxu1 %v2929_v35  ;;  %2603 = vmatpush3.bf16.msra.mxu0 %v2945_v46 }
 0x25c   :  { %2582 = vmatprep.subr.bf16.mxu1 %v2930_v18  ;;  %2604 = vmatprep.subr.bf16.mxu0 %v2946_v47 }
 0x25f   :  { %2583 = vmatpush3.bf16.msra.mxu1 %v2931_v37  ;;  %2605 = vmatpush3.bf16.msra.mxu0 %v2947_v48 }
 0x260   :  { %2584 = vmatprep.subr.bf16.mxu1 %v2932_v38  ;;  %2606 = vmatprep.subr.bf16.mxu0 %v2948_v49 }
 0x263   :  { %2585 = vmatpush3.bf16.msra.mxu1 %v2933_v41  ;;  %2607 = vmatpush3.bf16.msra.mxu0 %v2949_v50 }
 0x264   :  { %2586 = vmatprep.subr.bf16.mxu1 %v2934_v42  ;;  %2608 = vmatprep.subr.bf16.mxu0 %v2950_v51 }
 0x267   :  { %2587 = vmatpush3.bf16.msra.mxu1 %v2935_v45  ;;  %2609 = vmatpush3.bf16.msra.mxu0 %v2951_v55 }
 0x2ca   :  { %v1759_v61 = vpop.f32.mrf.mxu1  ;;  %v1800_v62 = vpop.f32.mrf.mxu0 }
 0x2cb   :  { %v1760_v63 = vadd.f32 %v1759_v61, %v1068_v59 }
 0x2cc   :  { %v1761_v0 = vpop.f32.mrf.mxu1  ;;  %v1802_v1 = vpop.f32.mrf.mxu0 }
 0x2cd   :  { %v1801_v2 = vadd.f32 %v1800_v62, %v1760_v63  ;;  %v1762_v3 = vadd.f32 %v1761_v0, %v1072_v60 }
 0x2ce   :  { %v1763_v4 = vpop.f32.mrf.mxu1  ;;  %v1804_v5 = vpop.f32.mrf.mxu0 }
 0x2cf   :  { %v1803_v6 = vadd.f32 %v1802_v1, %v1762_v3  ;;  %v1889_v7 = vmax.f32 %v1801_v2, 0.0 }
 0x2d0   :  { %v1764_v8 = vpop.f32.mrf.mxu1  ;;  %v1805_v9 = vpop.f32.mrf.mxu0 }
 0x2d1   :  { %v1890_v10 = vmax.f32 %v1803_v6, 0.0  ;;  %v1893_v12 = vpack.c.bf16 %v1889_v7, %v1889_v7 }
 0x2d3   :  { %v1894_v11 = vpack.c.bf16 %v1890_v10, %v1890_v10 }
 0x2d5   :  { %2192 = vmatprep.mubr.bf16.mxu1 %v1894_v11 }
 0x2d6   :  { %2193 = vmatmul.mubr.bf16.vlgmr.msra.gmra.mxu1 %v1893_v12 }
 0x30a   :  { %v1841_v13 = vpop.f32.mrf.mxu1  ;;  %v1882_v14 = vpop.f32.mrf.mxu0 }
 0x30b   :  { %v1842_v15 = vadd.f32 %v1841_v13, %v1076_v53 }
 0x30c   :  { %v1843_v16 = vpop.f32.mrf.mxu1  ;;  %v1884_v17 = vpop.f32.mrf.mxu0 }
 0x30d   :  { %v1883_v20 = vadd.f32 %v1882_v14, %v1842_v15  ;;  %v1844_v21 = vadd.f32 %v1843_v16, %v1080_v56 }
 0x30e   :  { %v1845_v22 = vpop.f32.mrf.mxu1  ;;  %v1886_v23 = vpop.f32.mrf.mxu0 }
 0x30f   :  { %v1885_v24 = vadd.f32 %v1884_v17, %v1844_v21  ;;  %v1891_v25 = vmax.f32 %v1883_v20, 0.0 }
 0x310   :  { %v1846_v26 = vpop.f32.mrf.mxu1  ;;  %v1887_v27 = vpop.f32.mrf.mxu0 }
 0x311   :  { %v1892_v28 = vmax.f32 %v1885_v24, 0.0  ;;  %v1895_v30 = vpack.c.bf16 %v1891_v25, %v1891_v25 }
 0x313   :  { %v1896_v29 = vpack.c.bf16 %v1892_v28, %v1892_v28 }
 0x315   :  { %2232 = vmatprep.mubr.bf16.mxu0 %v1896_v29 }
 0x316   :  { %2233 = vmatmul.mubr.bf16.vlgmr.msra.gmra.mxu0 %v1895_v30 }
 0x396   :  { %v2588_v52 = vpop.f32.mrf.mxu1 }
 0x398   :  { %v2589_v54 = vpop.f32.mrf.mxu1 }
 0x399   :  { %v2590_v32 = vadd.f32 %v2589_v54, %v2588_v52 }
 0x39a   :  { %v2591_v57 = vpop.f32.mrf.mxu1 }
 0x39b   :  { %v2195_v18 = vadd.f32 %v2590_v32, %v2473_v33 }
 0x39c   :  { %v2592_v31 = vpop.f32.mrf.mxu1 }
 0x3d6   :  { %v2610_v34 = vpop.f32.mrf.mxu0 }
 0x3d8   :  { %v2611_v35 = vpop.f32.mrf.mxu0 }
 0x3d9   :  { %v2612_v19 = vadd.f32 %v2611_v35, %v2610_v34 }
 0x3da   :  { %v2613_v36 = vpop.f32.mrf.mxu0 }
 0x3db   :  { %v2235_v37 = vadd.f32 %v2612_v19, %v2195_v18 }
 0x3dc   :  { %v2614_v38 = vpop.f32.mrf.mxu0 }
 0x3dd   :  { %2240 = vst [vmem:[#allocation10] sm:$0xff] %v2235_v37 }
 0x3de   :  { %3043 = shalt.err (!%p3040_p10)
}
 0x3df   :  { %2250 = dma.vmem_to_hbm [thread:$0]  %s2248_s25, 128, %s3210_s10, [#allocation4]  }
 0x3e0   :  { %3058 = dma.done.wait [#allocation4], 128  }
 0x3e1   :  { %3059 = vsyncadd [#allocation4], 4294967168 }
 0x3e2   :  { %2254 = vsyncpa [#allocation3], 1 }
 0x3e3   :  { %2255 = vsyncpa [#allocation6], 1 }
 0x3e4   :  { %2256 = vsyncpa [#allocation9], 1 }
 0x3e5   :  { %2257 = vsyncpa [#allocation4], 1 }

</bundles_post_ra>
